<compile_context>
chip_gen: v5e
topology: v5e:2x2
jax: 0.10.0
libtpu: 0.0.40
codegen_flags: <defaults>
</compile_context>

<pallas_src>
import functools

import jax
import jax.numpy as jnp
from jax.experimental import pallas as pl
from jax.experimental.pallas import tpu as pltpu

EPS_BN = 1e-5   # nn.BatchNorm1d default eps
EPS_GN = 1e-5   # GraphNorm default eps
VMEM_LIMIT_BYTES = 32 * 1024 * 1024   # conservative: valid on v5e/v6e/v7x


def _silu(x):
    return x * jax.nn.sigmoid(x)


# --------------------------------------------------------------------------
# Pallas kernel: the whole CartNetBlock, one grid step per layer
# --------------------------------------------------------------------------
def cartnet_block_kernel(
    x0_ref, e0_ref,
    gat_dst_ref, gat_src_ref, scat_ref, gsum_ref, gbc_ref, inv_cnt_ref,
    w1i_ref, w1j_ref, w1e_ref, b1_ref,
    wg2_ref, bg2_ref, wa2_ref, ba2_ref,
    bne_g_ref, bne_b_ref, bnn_g_ref, bnn_b_ref,
    gn_w_ref, gn_b_ref, gn_ms_ref,
    x_out_ref, e_out_ref,
    x_state_ref, e_state_ref,
):
    f32 = jnp.float32
    bf16 = jnp.bfloat16
    l = pl.program_id(0)

    # layer 0: load the residual state into the VMEM-resident scratch
    @pl.when(l == 0)
    def _():
        x_state_ref[...] = x0_ref[...]
        e_state_ref[...] = e0_ref[...]

    x = x_state_ref[...]                       # (N, H) f32 residual state
    e = e_state_ref[...]                       # (E, H) f32 edge state
    xb = x.astype(bf16)
    eb = e.astype(bf16)

    def mm(a, b):
        return jnp.dot(a, b, preferred_element_type=f32)

    # ---- endpoint gathers (bf16 one-hot row-select on the MXU) -------------
    x_i = mm(gat_dst_ref[...], xb)             # (E, H) = x[dst]
    x_j = mm(gat_src_ref[...], xb)             # (E, H) = x[src]

    # ---- fused first Linear of BOTH edge MLPs (no concat, three K=H slabs) --
    # output lanes [0:H) = gate hidden, [H:2H) = aggr hidden
    h1 = (mm(x_i.astype(bf16), w1i_ref[...])
          + mm(x_j.astype(bf16), w1j_ref[...])
          + mm(eb, w1e_ref[...])
          + b1_ref[...])                       # (E, 2H) f32
    h1 = _silu(h1).astype(bf16)

    # ---- second Linears: lane offsets folded into row-extended weights ------
    g = mm(h1, wg2_ref[...]) + bg2_ref[...]    # (E, H) gate pre-activation
    v = mm(h1, wa2_ref[...]) + ba2_ref[...]    # (E, H) aggregation value

    # ---- gate: BatchNorm1d (single-pass batch stats) -> sigmoid -------------
    mu_e = jnp.mean(g, axis=0, keepdims=True)
    var_e = jnp.mean(g * g, axis=0, keepdims=True) - mu_e * mu_e
    g_hat = (g - mu_e) * jax.lax.rsqrt(var_e + EPS_BN)
    gate = jax.nn.sigmoid(bne_g_ref[...] * g_hat + bne_b_ref[...])     # (E, H)

    msg = (gate * v).astype(bf16)              # gated message, bf16 for MXU

    # ---- scatter-add onto destination nodes (bf16 one-hot x bf16 -> f32) ----
    agg = mm(scat_ref[...], msg)               # (N, H)

    # ---- node update: SiLU(BatchNorm1d(agg)) + residual ----------------------
    mu_n = jnp.mean(agg, axis=0, keepdims=True)
    var_n = jnp.mean(agg * agg, axis=0, keepdims=True) - mu_n * mu_n
    a_hat = bnn_g_ref[...] * ((agg - mu_n) * jax.lax.rsqrt(var_n + EPS_BN)) \
        + bnn_b_ref[...]
    x_mid = _silu(a_hat) + x                   # batch.x after CartNet_layer

    e_new = e + gate                           # edge update

    # ---- GraphNorm (per-graph stats, single-pass / algebraic variance) ------
    inv_cnt = inv_cnt_ref[...]                             # (G, 1)
    mu_g = mm(gsum_ref[...], x_mid) * inv_cnt              # (G, H) E_g[x]
    ex2_g = mm(gsum_ref[...], x_mid * x_mid) * inv_cnt     # (G, H) E_g[x^2]
    ms = gn_ms_ref[...]                                    # (1, H) mean_scale
    # var_g = E[(x - ms*mu)^2] = E[x^2] - mu^2 * (2*ms - ms^2)
    var_g = ex2_g - mu_g * mu_g * (2.0 * ms - ms * ms)
    mean_bc = mm(gbc_ref[...], mu_g * ms)                  # (N, H) broadcast
    isd_bc = mm(gbc_ref[...], jax.lax.rsqrt(var_g + EPS_GN))
    centered = x_mid - mean_bc
    h_new = gn_w_ref[...] * centered * isd_bc + gn_b_ref[...]

    # block residual (dropout == identity in eval mode)
    x_new = x + h_new

    x_state_ref[...] = x_new
    e_state_ref[...] = e_new
    x_out_ref[...] = x_new
    e_out_ref[...] = e_new


# --------------------------------------------------------------------------
# Per-layer parameter packing (stacked on a leading layer axis)
# --------------------------------------------------------------------------
def _pack_params(params_list):
    H = params_list[0]["wg2"].shape[0]
    bf16 = jnp.bfloat16
    zeros = jnp.zeros((H, H), jnp.float32)

    def stack(fn):
        return jnp.stack([fn(p) for p in params_list], axis=0)

    return dict(
        # first-linear slabs: columns [0:H)=gate branch, [H:2H)=aggr branch
        w1i=stack(lambda p: jnp.concatenate([p["wg1"][0:H], p["wa1"][0:H]], 1)).astype(bf16),
        w1j=stack(lambda p: jnp.concatenate([p["wg1"][H:2 * H], p["wa1"][H:2 * H]], 1)).astype(bf16),
        w1e=stack(lambda p: jnp.concatenate([p["wg1"][2 * H:3 * H], p["wa1"][2 * H:3 * H]], 1)).astype(bf16),
        b1=stack(lambda p: jnp.concatenate([p["bg1"], p["ba1"]], 1)),
        # second linears: lane offset folded into the rows (no lane slicing)
        wg2e=stack(lambda p: jnp.concatenate([p["wg2"], zeros], 0)).astype(bf16),
        wa2e=stack(lambda p: jnp.concatenate([zeros, p["wa2"]], 0)).astype(bf16),
        bg2=stack(lambda p: p["bg2"]), ba2=stack(lambda p: p["ba2"]),
        bne_g=stack(lambda p: p["bne_g"]), bne_b=stack(lambda p: p["bne_b"]),
        bnn_g=stack(lambda p: p["bnn_g"]), bnn_b=stack(lambda p: p["bnn_b"]),
        gn_w=stack(lambda p: p["gn_w"]), gn_b=stack(lambda p: p["gn_b"]),
        gn_ms=stack(lambda p: p["gn_ms"]),
    )


def _check_vmem(N, E, G, H):
    """Hard guard: the monolithic per-layer compute must fit VMEM."""
    onehots = 3 * E * N * 2 + G * N * 4 + N * G * 4 + G * 4
    state_io = 6 * (N + E) * H * 4                       # in/out/scratch x,e
    weights = 2 * ((3 * H * 2 * H + 2 * 2 * H * H) * 2 + 10 * H * 4)  # dbl-buf
    interm = 8 * E * 2 * H * 4 + 8 * N * H * 4           # generous slack
    est = onehots + state_io + weights + interm
    assert est < int(0.75 * VMEM_LIMIT_BYTES), (
        f"graph too large for monolithic kernel (~{est/2**20:.1f} MiB VMEM); "
        "needs the edge-tiled variant (see TODO)")


# --------------------------------------------------------------------------
# Block forward: one pallas_call, grid = (num_layers,)
# --------------------------------------------------------------------------
@functools.partial(jax.jit, static_argnums=(5,))
def cartnet_block_forward(x, e, src, dst, graph_id, n_graphs, params_list):
    N, H = x.shape
    E = e.shape[0]
    G = n_graphs
    L = len(params_list)
    _check_vmem(N, E, G, H)

    # graph "glue" tensors, built once and DMA'd once (constant index_maps)
    gat_dst = (dst[:, None] == jnp.arange(N)[None, :]).astype(jnp.bfloat16)  # (E, N)
    gat_src = (src[:, None] == jnp.arange(N)[None, :]).astype(jnp.bfloat16)  # (E, N)
    scat = (dst[None, :] == jnp.arange(N)[:, None]).astype(jnp.bfloat16)     # (N, E)
    gsum = (graph_id[None, :] == jnp.arange(G)[:, None]).astype(jnp.float32)  # (G, N)
    gbc = gsum.T                                                             # (N, G)
    inv_cnt = 1.0 / jnp.sum(gsum, axis=1, keepdims=True)                     # (G, 1)

    pk = _pack_params(params_list)

    def const2(shape):   # whole array, resident / fetched once
        return pl.BlockSpec(shape, lambda l: (0, 0))

    def per_layer(shape):   # per-layer slice of a (L, ...) stacked param
        return pl.BlockSpec((None,) + shape, lambda l: (l,) + (0,) * len(shape))

    grid_spec = pltpu.PrefetchScalarGridSpec(
        num_scalar_prefetch=0,
        grid=(L,),
        in_specs=[
            const2((N, H)), const2((E, H)),
            const2((E, N)), const2((E, N)), const2((N, E)),
            const2((G, N)), const2((N, G)), const2((G, 1)),
            per_layer((H, 2 * H)), per_layer((H, 2 * H)), per_layer((H, 2 * H)),
            per_layer((1, 2 * H)),
            per_layer((2 * H, H)), per_layer((1, H)),
            per_layer((2 * H, H)), per_layer((1, H)),
            per_layer((1, H)), per_layer((1, H)),
            per_layer((1, H)), per_layer((1, H)),
            per_layer((1, H)), per_layer((1, H)), per_layer((1, H)),
        ],
        out_specs=(const2((N, H)), const2((E, H))),
        scratch_shapes=[pltpu.VMEM((N, H), jnp.float32),
                        pltpu.VMEM((E, H), jnp.float32)],
    )

    x_out, e_out = pl.pallas_call(
        cartnet_block_kernel,
        out_shape=(jax.ShapeDtypeStruct((N, H), jnp.float32),
                   jax.ShapeDtypeStruct((E, H), jnp.float32)),
        grid_spec=grid_spec,
        compiler_params=pltpu.CompilerParams(
            dimension_semantics=("arbitrary",),          # layers are sequential
            vmem_limit_bytes=VMEM_LIMIT_BYTES),
    )(x, e, gat_dst, gat_src, scat, gsum, gbc, inv_cnt,
      pk["w1i"], pk["w1j"], pk["w1e"], pk["b1"],
      pk["wg2e"], pk["bg2"], pk["wa2e"], pk["ba2"],
      pk["bne_g"], pk["bne_b"], pk["bnn_g"], pk["bnn_b"],
      pk["gn_w"], pk["gn_b"], pk["gn_ms"])
    return x_out, e_out


# --------------------------------------------------------------------------
# Pure-JAX reference (exact gather / segment_sum version) for verification
# --------------------------------------------------------------------------
def cartnet_block_reference(x, e, src, dst, graph_id, n_graphs, params_list):
    N = x.shape[0]
    counts = jax.ops.segment_sum(jnp.ones((N,), jnp.float32), graph_id, n_graphs)
    for p in params_list:
        x_i = x[dst]
        x_j = x[src]
        cat = jnp.concatenate([x_i, x_j, e], axis=-1)

        hg = _silu(cat @ p["wg1"] + p["bg1"])
        g = hg @ p["wg2"] + p["bg2"]
        mu = jnp.mean(g, axis=0, keepdims=True)
        var = jnp.mean((g - mu) ** 2, axis=0, keepdims=True)
        gate = jax.nn.sigmoid(p["bne_g"] * (g - mu) / jnp.sqrt(var + EPS_BN) + p["bne_b"])

        ha = _silu(cat @ p["wa1"] + p["ba1"])
        v = ha @ p["wa2"] + p["ba2"]
        msg = gate * v
        agg = jax.ops.segment_sum(msg, dst, N)

        mu_n = jnp.mean(agg, axis=0, keepdims=True)
        var_n = jnp.mean((agg - mu_n) ** 2, axis=0, keepdims=True)
        x_mid = _silu(p["bnn_g"] * (agg - mu_n) / jnp.sqrt(var_n + EPS_BN) + p["bnn_b"]) + x
        e = e + gate

        mean_g = jax.ops.segment_sum(x_mid, graph_id, n_graphs) / counts[:, None]
        centered = x_mid - mean_g[graph_id] * p["gn_ms"]
        var_g = jax.ops.segment_sum(centered ** 2, graph_id, n_graphs) / counts[:, None]
        h_new = p["gn_w"] * centered / jnp.sqrt(var_g + EPS_GN)[graph_id] + p["gn_b"]
        x = x + h_new
    return x, e


# --------------------------------------------------------------------------
# Deterministic parameter init (shapes from CartNet_layer / GraphNorm __init__)
# --------------------------------------------------------------------------
def init_params(key, num_layers, H):
    params = []
    for l in range(num_layers):
        ks = jax.random.split(jax.random.fold_in(key, l), 8)

        def lin_w(k, fan_in, fan_out):
            bound = 1.0 / float(fan_in) ** 0.5
            return jax.random.uniform(k, (fan_in, fan_out), jnp.float32, -bound, bound)

        def lin_b(k, fan_in, fan_out):
            bound = 1.0 / float(fan_in) ** 0.5
            return jax.random.uniform(k, (1, fan_out), jnp.float32, -bound, bound)

        p = dict(
            wg1=lin_w(ks[0], 3 * H, H), bg1=lin_b(ks[1], 3 * H, H),
            wg2=lin_w(ks[2], H, H),     bg2=lin_b(ks[3], H, H),
            wa1=lin_w(ks[4], 3 * H, H), ba1=lin_b(ks[5], 3 * H, H),
            wa2=lin_w(ks[6], H, H),     ba2=lin_b(ks[7], H, H),
            bne_g=jnp.ones((1, H), jnp.float32), bne_b=jnp.zeros((1, H), jnp.float32),
            bnn_g=jnp.ones((1, H), jnp.float32), bnn_b=jnp.zeros((1, H), jnp.float32),
            gn_w=jnp.ones((1, H), jnp.float32), gn_b=jnp.zeros((1, H), jnp.float32),
            gn_ms=jnp.ones((1, H), jnp.float32),
        )
        params.append(p)
    return params


# --------------------------------------------------------------------------
if __name__ == "__main__":
    NUM_LAYERS = 2
    H = 32                 # hidden_dim
    G = 2                  # graphs in the batch
    NODES_PER_GRAPH = 8
    N = G * NODES_PER_GRAPH
    EDGES_PER_GRAPH = 24
    E = G * EDGES_PER_GRAPH

    key = jax.random.PRNGKey(0)
    kx, ke, kp, ks0, kd0, ks1, kd1 = jax.random.split(key, 7)

    x = jax.random.normal(kx, (N, H), jnp.float32)            # batch.x
    e = jax.random.normal(ke, (E, H), jnp.float32)            # batch.edge_attr

    # edge_index (2, E), edges stay inside their own graph
    src0 = jax.random.randint(ks0, (EDGES_PER_GRAPH,), 0, NODES_PER_GRAPH)
    dst0 = jax.random.randint(kd0, (EDGES_PER_GRAPH,), 0, NODES_PER_GRAPH)
    src1 = jax.random.randint(ks1, (EDGES_PER_GRAPH,), 0, NODES_PER_GRAPH) + NODES_PER_GRAPH
    dst1 = jax.random.randint(kd1, (EDGES_PER_GRAPH,), 0, NODES_PER_GRAPH) + NODES_PER_GRAPH
    src = jnp.concatenate([src0, src1]).astype(jnp.int32)      # edge_index[0] (source j)
    dst = jnp.concatenate([dst0, dst1]).astype(jnp.int32)      # edge_index[1] (target i)
    graph_id = jnp.repeat(jnp.arange(G, dtype=jnp.int32), NODES_PER_GRAPH)   # batch.batch

    params = init_params(kp, NUM_LAYERS, H)

    x_out, e_out = cartnet_block_forward(x, e, src, dst, graph_id, G, params)
    jax.block_until_ready((x_out, e_out))

    x_ref, e_ref = cartnet_block_reference(x, e, src, dst, graph_id, G, params)
    # Tolerance accounts for intentional bf16 MXU operands (f32 accumulate) and
    # the single-pass E[x^2]-E[x]^2 statistics inside the kernel, vs. the
    # exact-f32 gather / segment_sum path of the reference.
    assert jnp.allclose(x_out, x_ref, rtol=2e-2, atol=2e-2), "node feature mismatch"
    assert jnp.allclose(e_out, e_ref, rtol=2e-2, atol=2e-2), "edge feature mismatch"

    print("KERNEL_OK")
</pallas_src>

<mosaic_0001>
module attributes {stable_mosaic.version = 11 : i64} {
  func.func @cartnet_block_kernel(%arg0: i32, %arg1: memref<16x32xf32, #tpu.memory_space<vmem>>, %arg2: memref<48x32xf32, #tpu.memory_space<vmem>>, %arg3: memref<48x16xbf16, #tpu.memory_space<vmem>>, %arg4: memref<48x16xbf16, #tpu.memory_space<vmem>>, %arg5: memref<16x48xbf16, #tpu.memory_space<vmem>>, %arg6: memref<2x16xf32, #tpu.memory_space<vmem>>, %arg7: memref<16x2xf32, #tpu.memory_space<vmem>>, %arg8: memref<2x1xf32, #tpu.memory_space<vmem>>, %arg9: memref<1x32x64xbf16, #tpu.memory_space<vmem>>, %arg10: memref<1x32x64xbf16, #tpu.memory_space<vmem>>, %arg11: memref<1x32x64xbf16, #tpu.memory_space<vmem>>, %arg12: memref<1x1x64xf32, #tpu.memory_space<vmem>>, %arg13: memref<1x64x32xbf16, #tpu.memory_space<vmem>>, %arg14: memref<1x1x32xf32, #tpu.memory_space<vmem>>, %arg15: memref<1x64x32xbf16, #tpu.memory_space<vmem>>, %arg16: memref<1x1x32xf32, #tpu.memory_space<vmem>>, %arg17: memref<1x1x32xf32, #tpu.memory_space<vmem>>, %arg18: memref<1x1x32xf32, #tpu.memory_space<vmem>>, %arg19: memref<1x1x32xf32, #tpu.memory_space<vmem>>, %arg20: memref<1x1x32xf32, #tpu.memory_space<vmem>>, %arg21: memref<1x1x32xf32, #tpu.memory_space<vmem>>, %arg22: memref<1x1x32xf32, #tpu.memory_space<vmem>>, %arg23: memref<1x1x32xf32, #tpu.memory_space<vmem>>, %arg24: memref<16x32xf32, #tpu.memory_space<vmem>>, %arg25: memref<48x32xf32, #tpu.memory_space<vmem>>, %arg26: memref<16x32xf32, #tpu.memory_space<vmem>>, %arg27: memref<48x32xf32, #tpu.memory_space<vmem>>) attributes {dimension_semantics = [#tpu.dimension_semantics<arbitrary>], iteration_bounds = array<i64: 2>, scalar_prefetch = 0 : i64, scratch_operands = 2 : i64, tpu.core_type = #tpu.core_type<tc>, window_params = [{pipeline_mode = #tpu.pipeline_mode<synchronous>, transform_indices = @transform_0, window_bounds = array<i64: 16, 32>}, {pipeline_mode = #tpu.pipeline_mode<synchronous>, transform_indices = @transform_1, window_bounds = array<i64: 48, 32>}, {pipeline_mode = #tpu.pipeline_mode<synchronous>, transform_indices = @transform_2, window_bounds = array<i64: 48, 16>}, {pipeline_mode = #tpu.pipeline_mode<synchronous>, transform_indices = @transform_3, window_bounds = array<i64: 48, 16>}, {pipeline_mode = #tpu.pipeline_mode<synchronous>, transform_indices = @transform_4, window_bounds = array<i64: 16, 48>}, {pipeline_mode = #tpu.pipeline_mode<synchronous>, transform_indices = @transform_5, window_bounds = array<i64: 2, 16>}, {pipeline_mode = #tpu.pipeline_mode<synchronous>, transform_indices = @transform_6, window_bounds = array<i64: 16, 2>}, {pipeline_mode = #tpu.pipeline_mode<synchronous>, transform_indices = @transform_7, window_bounds = array<i64: 2, 1>}, {transform_indices = @transform_8, window_bounds = array<i64: 1, 32, 64>}, {transform_indices = @transform_9, window_bounds = array<i64: 1, 32, 64>}, {transform_indices = @transform_10, window_bounds = array<i64: 1, 32, 64>}, {transform_indices = @transform_11, window_bounds = array<i64: 1, 1, 64>}, {transform_indices = @transform_12, window_bounds = array<i64: 1, 64, 32>}, {transform_indices = @transform_13, window_bounds = array<i64: 1, 1, 32>}, {transform_indices = @transform_14, window_bounds = array<i64: 1, 64, 32>}, {transform_indices = @transform_15, window_bounds = array<i64: 1, 1, 32>}, {transform_indices = @transform_16, window_bounds = array<i64: 1, 1, 32>}, {transform_indices = @transform_17, window_bounds = array<i64: 1, 1, 32>}, {transform_indices = @transform_18, window_bounds = array<i64: 1, 1, 32>}, {transform_indices = @transform_19, window_bounds = array<i64: 1, 1, 32>}, {transform_indices = @transform_20, window_bounds = array<i64: 1, 1, 32>}, {transform_indices = @transform_21, window_bounds = array<i64: 1, 1, 32>}, {transform_indices = @transform_22, window_bounds = array<i64: 1, 1, 32>}, {pipeline_mode = #tpu.pipeline_mode<synchronous>, transform_indices = @transform_23, window_bounds = array<i64: 16, 32>}, {pipeline_mode = #tpu.pipeline_mode<synchronous>, transform_indices = @transform_24, window_bounds = array<i64: 48, 32>}]} {
    %c0_i32 = arith.constant 0 : i32
    %0 = arith.cmpi eq, %arg0, %c0_i32 : i32
    %1 = arith.extui %0 : i1 to i32
    %c0_i32_0 = arith.constant 0 : i32
    %2 = arith.cmpi ne, %1, %c0_i32_0 : i32
    scf.if %2 {
      %c0_99 = arith.constant 0 : index
      %c0_100 = arith.constant 0 : index
      %162 = vector.load %arg1[%c0_99, %c0_100] : memref<16x32xf32, #tpu.memory_space<vmem>>, vector<16x32xf32>
      %c0_101 = arith.constant 0 : index
      %c0_102 = arith.constant 0 : index
      %163 = vector.load %arg26[%c0_101, %c0_102] : memref<16x32xf32, #tpu.memory_space<vmem>>, vector<16x32xf32>
      tpu.vector_store %arg26[%c0_101, %c0_102], %162 {strides = array<i32>} : memref<16x32xf32, #tpu.memory_space<vmem>>, vector<16x32xf32>,
      %c0_103 = arith.constant 0 : index
      %c0_104 = arith.constant 0 : index
      %164 = vector.load %arg2[%c0_103, %c0_104] : memref<48x32xf32, #tpu.memory_space<vmem>>, vector<48x32xf32>
      %c0_105 = arith.constant 0 : index
      %c0_106 = arith.constant 0 : index
      %165 = vector.load %arg27[%c0_105, %c0_106] : memref<48x32xf32, #tpu.memory_space<vmem>>, vector<48x32xf32>
      tpu.vector_store %arg27[%c0_105, %c0_106], %164 {strides = array<i32>} : memref<48x32xf32, #tpu.memory_space<vmem>>, vector<48x32xf32>,
    } else {
    }
    %c0 = arith.constant 0 : index
    %c0_1 = arith.constant 0 : index
    %3 = vector.load %arg26[%c0, %c0_1] : memref<16x32xf32, #tpu.memory_space<vmem>>, vector<16x32xf32>
    %c0_2 = arith.constant 0 : index
    %c0_3 = arith.constant 0 : index
    %4 = vector.load %arg27[%c0_2, %c0_3] : memref<48x32xf32, #tpu.memory_space<vmem>>, vector<48x32xf32>
    %5 = arith.truncf %3 : vector<16x32xf32> to vector<16x32xbf16>
    %6 = arith.truncf %4 : vector<48x32xf32> to vector<48x32xbf16>
    %c0_4 = arith.constant 0 : index
    %c0_5 = arith.constant 0 : index
    %7 = vector.load %arg3[%c0_4, %c0_5] : memref<48x16xbf16, #tpu.memory_space<vmem>>, vector<48x16xbf16>
    %cst = arith.constant dense<0.000000e+00> : vector<48x32xf32>
    %8 = tpu.matmul %7, %5, %cst {dimension_numbers = #tpu.dot_dimension_numbers<[1], [0], [0], [1], [0, 0, 1, 1], [], []>} : vector<48x16xbf16>, vector<16x32xbf16>, vector<48x32xf32> -> vector<48x32xf32>
    %c0_6 = arith.constant 0 : index
    %c0_7 = arith.constant 0 : index
    %9 = vector.load %arg4[%c0_6, %c0_7] : memref<48x16xbf16, #tpu.memory_space<vmem>>, vector<48x16xbf16>
    %cst_8 = arith.constant dense<0.000000e+00> : vector<48x32xf32>
    %10 = tpu.matmul %9, %5, %cst_8 {dimension_numbers = #tpu.dot_dimension_numbers<[1], [0], [0], [1], [0, 0, 1, 1], [], []>} : vector<48x16xbf16>, vector<16x32xbf16>, vector<48x32xf32> -> vector<48x32xf32>
    %11 = arith.truncf %8 : vector<48x32xf32> to vector<48x32xbf16>
    %c0_9 = arith.constant 0 : index
    %c0_10 = arith.constant 0 : index
    %c0_11 = arith.constant 0 : index
    %12 = vector.load %arg9[%c0_9, %c0_10, %c0_11] : memref<1x32x64xbf16, #tpu.memory_space<vmem>>, vector<1x32x64xbf16>
    %13 = vector.shape_cast %12 : vector<1x32x64xbf16> to vector<32x64xbf16>
    %cst_12 = arith.constant dense<0.000000e+00> : vector<48x64xf32>
    %14 = tpu.matmul %11, %13, %cst_12 {dimension_numbers = #tpu.dot_dimension_numbers<[1], [0], [0], [1], [0, 0, 1, 1], [], []>} : vector<48x32xbf16>, vector<32x64xbf16>, vector<48x64xf32> -> vector<48x64xf32>
    %15 = arith.truncf %10 : vector<48x32xf32> to vector<48x32xbf16>
    %c0_13 = arith.constant 0 : index
    %c0_14 = arith.constant 0 : index
    %c0_15 = arith.constant 0 : index
    %16 = vector.load %arg10[%c0_13, %c0_14, %c0_15] : memref<1x32x64xbf16, #tpu.memory_space<vmem>>, vector<1x32x64xbf16>
    %17 = vector.shape_cast %16 : vector<1x32x64xbf16> to vector<32x64xbf16>
    %cst_16 = arith.constant dense<0.000000e+00> : vector<48x64xf32>
    %18 = tpu.matmul %15, %17, %cst_16 {dimension_numbers = #tpu.dot_dimension_numbers<[1], [0], [0], [1], [0, 0, 1, 1], [], []>} : vector<48x32xbf16>, vector<32x64xbf16>, vector<48x64xf32> -> vector<48x64xf32>
    %19 = arith.addf %14, %18 : vector<48x64xf32>
    %c0_17 = arith.constant 0 : index
    %c0_18 = arith.constant 0 : index
    %c0_19 = arith.constant 0 : index
    %20 = vector.load %arg11[%c0_17, %c0_18, %c0_19] : memref<1x32x64xbf16, #tpu.memory_space<vmem>>, vector<1x32x64xbf16>
    %21 = vector.shape_cast %20 : vector<1x32x64xbf16> to vector<32x64xbf16>
    %cst_20 = arith.constant dense<0.000000e+00> : vector<48x64xf32>
    %22 = tpu.matmul %6, %21, %cst_20 {dimension_numbers = #tpu.dot_dimension_numbers<[1], [0], [0], [1], [0, 0, 1, 1], [], []>} : vector<48x32xbf16>, vector<32x64xbf16>, vector<48x64xf32> -> vector<48x64xf32>
    %23 = arith.addf %19, %22 : vector<48x64xf32>
    %c0_21 = arith.constant 0 : index
    %c0_22 = arith.constant 0 : index
    %c0_23 = arith.constant 0 : index
    %24 = vector.load %arg12[%c0_21, %c0_22, %c0_23] : memref<1x1x64xf32, #tpu.memory_space<vmem>>, vector<1x1x64xf32>
    %25 = vector.shape_cast %24 : vector<1x1x64xf32> to vector<1x64xf32>
    %26 = vector.broadcast %25 : vector<1x64xf32> to vector<48x64xf32>
    %27 = arith.addf %23, %26 : vector<48x64xf32>
    %28 = arith.negf %27 : vector<48x64xf32>
    %29 = math.exp %28 : vector<48x64xf32>
    %cst_24 = arith.constant 1.000000e+00 : f32
    %30 = vector.broadcast %cst_24 : f32 to vector<48x64xf32>
    %31 = arith.addf %30, %29 : vector<48x64xf32>
    %32 = arith.divf %30, %31 : vector<48x64xf32>
    %33 = arith.mulf %27, %32 : vector<48x64xf32>
    %34 = arith.truncf %33 : vector<48x64xf32> to vector<48x64xbf16>
    %c0_25 = arith.constant 0 : index
    %c0_26 = arith.constant 0 : index
    %c0_27 = arith.constant 0 : index
    %35 = vector.load %arg13[%c0_25, %c0_26, %c0_27] : memref<1x64x32xbf16, #tpu.memory_space<vmem>>, vector<1x64x32xbf16>
    %36 = vector.shape_cast %35 : vector<1x64x32xbf16> to vector<64x32xbf16>
    %cst_28 = arith.constant dense<0.000000e+00> : vector<48x32xf32>
    %37 = tpu.matmul %34, %36, %cst_28 {dimension_numbers = #tpu.dot_dimension_numbers<[1], [0], [0], [1], [0, 0, 1, 1], [], []>} : vector<48x64xbf16>, vector<64x32xbf16>, vector<48x32xf32> -> vector<48x32xf32>
    %c0_29 = arith.constant 0 : index
    %c0_30 = arith.constant 0 : index
    %c0_31 = arith.constant 0 : index
    %38 = vector.load %arg14[%c0_29, %c0_30, %c0_31] : memref<1x1x32xf32, #tpu.memory_space<vmem>>, vector<1x1x32xf32>
    %39 = vector.shape_cast %38 : vector<1x1x32xf32> to vector<1x32xf32>
    %40 = vector.broadcast %39 : vector<1x32xf32> to vector<48x32xf32>
    %41 = arith.addf %37, %40 : vector<48x32xf32>
    %c0_32 = arith.constant 0 : index
    %c0_33 = arith.constant 0 : index
    %c0_34 = arith.constant 0 : index
    %42 = vector.load %arg15[%c0_32, %c0_33, %c0_34] : memref<1x64x32xbf16, #tpu.memory_space<vmem>>, vector<1x64x32xbf16>
    %43 = vector.shape_cast %42 : vector<1x64x32xbf16> to vector<64x32xbf16>
    %cst_35 = arith.constant dense<0.000000e+00> : vector<48x32xf32>
    %44 = tpu.matmul %34, %43, %cst_35 {dimension_numbers = #tpu.dot_dimension_numbers<[1], [0], [0], [1], [0, 0, 1, 1], [], []>} : vector<48x64xbf16>, vector<64x32xbf16>, vector<48x32xf32> -> vector<48x32xf32>
    %c0_36 = arith.constant 0 : index
    %c0_37 = arith.constant 0 : index
    %c0_38 = arith.constant 0 : index
    %45 = vector.load %arg16[%c0_36, %c0_37, %c0_38] : memref<1x1x32xf32, #tpu.memory_space<vmem>>, vector<1x1x32xf32>
    %46 = vector.shape_cast %45 : vector<1x1x32xf32> to vector<1x32xf32>
    %47 = vector.broadcast %46 : vector<1x32xf32> to vector<48x32xf32>
    %48 = arith.addf %44, %47 : vector<48x32xf32>
    %cst_39 = arith.constant dense<0.000000e+00> : vector<32xf32>
    %49 = vector.multi_reduction <add>, %41, %cst_39 [0] : vector<48x32xf32> to vector<32xf32>
    %50 = vector.shape_cast %49 : vector<32xf32> to vector<1x32xf32>
    %cst_40 = arith.constant 4.800000e+01 : f32
    %51 = vector.broadcast %cst_40 : f32 to vector<1x32xf32>
    %52 = arith.divf %50, %51 : vector<1x32xf32>
    %53 = arith.mulf %41, %41 : vector<48x32xf32>
    %cst_41 = arith.constant dense<0.000000e+00> : vector<32xf32>
    %54 = vector.multi_reduction <add>, %53, %cst_41 [0] : vector<48x32xf32> to vector<32xf32>
    %55 = vector.shape_cast %54 : vector<32xf32> to vector<1x32xf32>
    %cst_42 = arith.constant 4.800000e+01 : f32
    %56 = vector.broadcast %cst_42 : f32 to vector<1x32xf32>
    %57 = arith.divf %55, %56 : vector<1x32xf32>
    %58 = arith.mulf %52, %52 : vector<1x32xf32>
    %59 = arith.subf %57, %58 : vector<1x32xf32>
    %60 = vector.broadcast %52 : vector<1x32xf32> to vector<48x32xf32>
    %61 = arith.subf %41, %60 : vector<48x32xf32>
    %cst_43 = arith.constant 9.99999974E-6 : f32
    %62 = vector.broadcast %cst_43 : f32 to vector<1x32xf32>
    %63 = arith.addf %59, %62 : vector<1x32xf32>
    %64 = math.rsqrt %63 : vector<1x32xf32>
    %65 = vector.broadcast %64 : vector<1x32xf32> to vector<48x32xf32>
    %66 = arith.mulf %61, %65 : vector<48x32xf32>
    %c0_44 = arith.constant 0 : index
    %c0_45 = arith.constant 0 : index
    %c0_46 = arith.constant 0 : index
    %67 = vector.load %arg17[%c0_44, %c0_45, %c0_46] : memref<1x1x32xf32, #tpu.memory_space<vmem>>, vector<1x1x32xf32>
    %68 = vector.shape_cast %67 : vector<1x1x32xf32> to vector<1x32xf32>
    %69 = vector.broadcast %68 : vector<1x32xf32> to vector<48x32xf32>
    %70 = arith.mulf %69, %66 : vector<48x32xf32>
    %c0_47 = arith.constant 0 : index
    %c0_48 = arith.constant 0 : index
    %c0_49 = arith.constant 0 : index
    %71 = vector.load %arg18[%c0_47, %c0_48, %c0_49] : memref<1x1x32xf32, #tpu.memory_space<vmem>>, vector<1x1x32xf32>
    %72 = vector.shape_cast %71 : vector<1x1x32xf32> to vector<1x32xf32>
    %73 = vector.broadcast %72 : vector<1x32xf32> to vector<48x32xf32>
    %74 = arith.addf %70, %73 : vector<48x32xf32>
    %75 = arith.negf %74 : vector<48x32xf32>
    %76 = math.exp %75 : vector<48x32xf32>
    %cst_50 = arith.constant 1.000000e+00 : f32
    %77 = vector.broadcast %cst_50 : f32 to vector<48x32xf32>
    %78 = arith.addf %77, %76 : vector<48x32xf32>
    %79 = arith.divf %77, %78 : vector<48x32xf32>
    %80 = arith.mulf %79, %48 : vector<48x32xf32>
    %81 = arith.truncf %80 : vector<48x32xf32> to vector<48x32xbf16>
    %c0_51 = arith.constant 0 : index
    %c0_52 = arith.constant 0 : index
    %82 = vector.load %arg5[%c0_51, %c0_52] : memref<16x48xbf16, #tpu.memory_space<vmem>>, vector<16x48xbf16>
    %cst_53 = arith.constant dense<0.000000e+00> : vector<16x32xf32>
    %83 = tpu.matmul %82, %81, %cst_53 {dimension_numbers = #tpu.dot_dimension_numbers<[1], [0], [0], [1], [0, 0, 1, 1], [], []>} : vector<16x48xbf16>, vector<48x32xbf16>, vector<16x32xf32> -> vector<16x32xf32>
    %cst_54 = arith.constant dense<0.000000e+00> : vector<32xf32>
    %84 = vector.multi_reduction <add>, %83, %cst_54 [0] : vector<16x32xf32> to vector<32xf32>
    %85 = vector.shape_cast %84 : vector<32xf32> to vector<1x32xf32>
    %cst_55 = arith.constant 1.600000e+01 : f32
    %86 = vector.broadcast %cst_55 : f32 to vector<1x32xf32>
    %87 = arith.divf %85, %86 : vector<1x32xf32>
    %88 = arith.mulf %83, %83 : vector<16x32xf32>
    %cst_56 = arith.constant dense<0.000000e+00> : vector<32xf32>
    %89 = vector.multi_reduction <add>, %88, %cst_56 [0] : vector<16x32xf32> to vector<32xf32>
    %90 = vector.shape_cast %89 : vector<32xf32> to vector<1x32xf32>
    %cst_57 = arith.constant 1.600000e+01 : f32
    %91 = vector.broadcast %cst_57 : f32 to vector<1x32xf32>
    %92 = arith.divf %90, %91 : vector<1x32xf32>
    %93 = arith.mulf %87, %87 : vector<1x32xf32>
    %94 = arith.subf %92, %93 : vector<1x32xf32>
    %c0_58 = arith.constant 0 : index
    %c0_59 = arith.constant 0 : index
    %c0_60 = arith.constant 0 : index
    %95 = vector.load %arg19[%c0_58, %c0_59, %c0_60] : memref<1x1x32xf32, #tpu.memory_space<vmem>>, vector<1x1x32xf32>
    %96 = vector.shape_cast %95 : vector<1x1x32xf32> to vector<1x32xf32>
    %97 = vector.broadcast %87 : vector<1x32xf32> to vector<16x32xf32>
    %98 = arith.subf %83, %97 : vector<16x32xf32>
    %cst_61 = arith.constant 9.99999974E-6 : f32
    %99 = vector.broadcast %cst_61 : f32 to vector<1x32xf32>
    %100 = arith.addf %94, %99 : vector<1x32xf32>
    %101 = math.rsqrt %100 : vector<1x32xf32>
    %102 = vector.broadcast %101 : vector<1x32xf32> to vector<16x32xf32>
    %103 = arith.mulf %98, %102 : vector<16x32xf32>
    %104 = vector.broadcast %96 : vector<1x32xf32> to vector<16x32xf32>
    %105 = arith.mulf %104, %103 : vector<16x32xf32>
    %c0_62 = arith.constant 0 : index
    %c0_63 = arith.constant 0 : index
    %c0_64 = arith.constant 0 : index
    %106 = vector.load %arg20[%c0_62, %c0_63, %c0_64] : memref<1x1x32xf32, #tpu.memory_space<vmem>>, vector<1x1x32xf32>
    %107 = vector.shape_cast %106 : vector<1x1x32xf32> to vector<1x32xf32>
    %108 = vector.broadcast %107 : vector<1x32xf32> to vector<16x32xf32>
    %109 = arith.addf %105, %108 : vector<16x32xf32>
    %110 = arith.negf %109 : vector<16x32xf32>
    %111 = math.exp %110 : vector<16x32xf32>
    %cst_65 = arith.constant 1.000000e+00 : f32
    %112 = vector.broadcast %cst_65 : f32 to vector<16x32xf32>
    %113 = arith.addf %112, %111 : vector<16x32xf32>
    %114 = arith.divf %112, %113 : vector<16x32xf32>
    %115 = arith.mulf %109, %114 : vector<16x32xf32>
    %116 = arith.addf %115, %3 : vector<16x32xf32>
    %117 = arith.addf %4, %79 : vector<48x32xf32>
    %c0_66 = arith.constant 0 : index
    %c0_67 = arith.constant 0 : index
    %118 = vector.load %arg8[%c0_66, %c0_67] : memref<2x1xf32, #tpu.memory_space<vmem>>, vector<2x1xf32>
    %c0_68 = arith.constant 0 : index
    %c0_69 = arith.constant 0 : index
    %119 = vector.load %arg6[%c0_68, %c0_69] : memref<2x16xf32, #tpu.memory_space<vmem>>, vector<2x16xf32>
    %cst_70 = arith.constant dense<0.000000e+00> : vector<2x32xf32>
    %120 = tpu.matmul %119, %116, %cst_70 {dimension_numbers = #tpu.dot_dimension_numbers<[1], [0], [0], [1], [0, 0, 1, 1], [], []>} : vector<2x16xf32>, vector<16x32xf32>, vector<2x32xf32> -> vector<2x32xf32>
    %121 = vector.broadcast %118 : vector<2x1xf32> to vector<2x32xf32>
    %122 = arith.mulf %120, %121 : vector<2x32xf32>
    %c0_71 = arith.constant 0 : index
    %c0_72 = arith.constant 0 : index
    %123 = vector.load %arg6[%c0_71, %c0_72] : memref<2x16xf32, #tpu.memory_space<vmem>>, vector<2x16xf32>
    %124 = arith.mulf %116, %116 : vector<16x32xf32>
    %cst_73 = arith.constant dense<0.000000e+00> : vector<2x32xf32>
    %125 = tpu.matmul %123, %124, %cst_73 {dimension_numbers = #tpu.dot_dimension_numbers<[1], [0], [0], [1], [0, 0, 1, 1], [], []>} : vector<2x16xf32>, vector<16x32xf32>, vector<2x32xf32> -> vector<2x32xf32>
    %126 = vector.broadcast %118 : vector<2x1xf32> to vector<2x32xf32>
    %127 = arith.mulf %125, %126 : vector<2x32xf32>
    %c0_74 = arith.constant 0 : index
    %c0_75 = arith.constant 0 : index
    %c0_76 = arith.constant 0 : index
    %128 = vector.load %arg23[%c0_74, %c0_75, %c0_76] : memref<1x1x32xf32, #tpu.memory_space<vmem>>, vector<1x1x32xf32>
    %129 = vector.shape_cast %128 : vector<1x1x32xf32> to vector<1x32xf32>
    %130 = arith.mulf %122, %122 : vector<2x32xf32>
    %cst_77 = arith.constant 2.000000e+00 : f32
    %131 = vector.broadcast %cst_77 : f32 to vector<1x32xf32>
    %132 = arith.mulf %131, %129 : vector<1x32xf32>
    %133 = arith.mulf %129, %129 : vector<1x32xf32>
    %134 = arith.subf %132, %133 : vector<1x32xf32>
    %135 = vector.broadcast %134 : vector<1x32xf32> to vector<2x32xf32>
    %136 = arith.mulf %130, %135 : vector<2x32xf32>
    %137 = arith.subf %127, %136 : vector<2x32xf32>
    %c0_78 = arith.constant 0 : index
    %c0_79 = arith.constant 0 : index
    %138 = vector.load %arg7[%c0_78, %c0_79] : memref<16x2xf32, #tpu.memory_space<vmem>>, vector<16x2xf32>
    %139 = vector.broadcast %129 : vector<1x32xf32> to vector<2x32xf32>
    %140 = arith.mulf %122, %139 : vector<2x32xf32>
    %cst_80 = arith.constant dense<0.000000e+00> : vector<16x32xf32>
    %141 = tpu.matmul %138, %140, %cst_80 {dimension_numbers = #tpu.dot_dimension_numbers<[1], [0], [0], [1], [0, 0, 1, 1], [], []>} : vector<16x2xf32>, vector<2x32xf32>, vector<16x32xf32> -> vector<16x32xf32>
    %c0_81 = arith.constant 0 : index
    %c0_82 = arith.constant 0 : index
    %142 = vector.load %arg7[%c0_81, %c0_82] : memref<16x2xf32, #tpu.memory_space<vmem>>, vector<16x2xf32>
    %cst_83 = arith.constant 9.99999974E-6 : f32
    %143 = vector.broadcast %cst_83 : f32 to vector<2x32xf32>
    %144 = arith.addf %137, %143 : vector<2x32xf32>
    %145 = math.rsqrt %144 : vector<2x32xf32>
    %cst_84 = arith.constant dense<0.000000e+00> : vector<16x32xf32>
    %146 = tpu.matmul %142, %145, %cst_84 {dimension_numbers = #tpu.dot_dimension_numbers<[1], [0], [0], [1], [0, 0, 1, 1], [], []>} : vector<16x2xf32>, vector<2x32xf32>, vector<16x32xf32> -> vector<16x32xf32>
    %147 = arith.subf %116, %141 : vector<16x32xf32>
    %c0_85 = arith.constant 0 : index
    %c0_86 = arith.constant 0 : index
    %c0_87 = arith.constant 0 : index
    %148 = vector.load %arg21[%c0_85, %c0_86, %c0_87] : memref<1x1x32xf32, #tpu.memory_space<vmem>>, vector<1x1x32xf32>
    %149 = vector.shape_cast %148 : vector<1x1x32xf32> to vector<1x32xf32>
    %150 = vector.broadcast %149 : vector<1x32xf32> to vector<16x32xf32>
    %151 = arith.mulf %150, %147 : vector<16x32xf32>
    %152 = arith.mulf %151, %146 : vector<16x32xf32>
    %c0_88 = arith.constant 0 : index
    %c0_89 = arith.constant 0 : index
    %c0_90 = arith.constant 0 : index
    %153 = vector.load %arg22[%c0_88, %c0_89, %c0_90] : memref<1x1x32xf32, #tpu.memory_space<vmem>>, vector<1x1x32xf32>
    %154 = vector.shape_cast %153 : vector<1x1x32xf32> to vector<1x32xf32>
    %155 = vector.broadcast %154 : vector<1x32xf32> to vector<16x32xf32>
    %156 = arith.addf %152, %155 : vector<16x32xf32>
    %157 = arith.addf %3, %156 : vector<16x32xf32>
    %c0_91 = arith.constant 0 : index
    %c0_92 = arith.constant 0 : index
    %158 = vector.load %arg26[%c0_91, %c0_92] : memref<16x32xf32, #tpu.memory_space<vmem>>, vector<16x32xf32>
    tpu.vector_store %arg26[%c0_91, %c0_92], %157 {strides = array<i32>} : memref<16x32xf32, #tpu.memory_space<vmem>>, vector<16x32xf32>,
    %c0_93 = arith.constant 0 : index
    %c0_94 = arith.constant 0 : index
    %159 = vector.load %arg27[%c0_93, %c0_94] : memref<48x32xf32, #tpu.memory_space<vmem>>, vector<48x32xf32>
    tpu.vector_store %arg27[%c0_93, %c0_94], %117 {strides = array<i32>} : memref<48x32xf32, #tpu.memory_space<vmem>>, vector<48x32xf32>,
    %c0_95 = arith.constant 0 : index
    %c0_96 = arith.constant 0 : index
    %160 = vector.load %arg24[%c0_95, %c0_96] : memref<16x32xf32, #tpu.memory_space<vmem>>, vector<16x32xf32>
    tpu.vector_store %arg24[%c0_95, %c0_96], %157 {strides = array<i32>} : memref<16x32xf32, #tpu.memory_space<vmem>>, vector<16x32xf32>,
    %c0_97 = arith.constant 0 : index
    %c0_98 = arith.constant 0 : index
    %161 = vector.load %arg25[%c0_97, %c0_98] : memref<48x32xf32, #tpu.memory_space<vmem>>, vector<48x32xf32>
    tpu.vector_store %arg25[%c0_97, %c0_98], %117 {strides = array<i32>} : memref<48x32xf32, #tpu.memory_space<vmem>>, vector<48x32xf32>,
    return
  }
  func.func @transform_0(%arg0: i32) -> (i32, i32) {
    %c0_i32 = arith.constant 0 : i32
    %c0_i32_0 = arith.constant 0 : i32
    %c0_i32_1 = arith.constant 0 : i32
    return %c0_i32, %c0_i32_0 : i32, i32
  }
  func.func @transform_1(%arg0: i32) -> (i32, i32) {
    %c0_i32 = arith.constant 0 : i32
    %c0_i32_0 = arith.constant 0 : i32
    %c0_i32_1 = arith.constant 0 : i32
    return %c0_i32, %c0_i32_0 : i32, i32
  }
  func.func @transform_2(%arg0: i32) -> (i32, i32) {
    %c0_i32 = arith.constant 0 : i32
    %c0_i32_0 = arith.constant 0 : i32
    %c0_i32_1 = arith.constant 0 : i32
    return %c0_i32, %c0_i32_0 : i32, i32
  }
  func.func @transform_3(%arg0: i32) -> (i32, i32) {
    %c0_i32 = arith.constant 0 : i32
    %c0_i32_0 = arith.constant 0 : i32
    %c0_i32_1 = arith.constant 0 : i32
    return %c0_i32, %c0_i32_0 : i32, i32
  }
  func.func @transform_4(%arg0: i32) -> (i32, i32) {
    %c0_i32 = arith.constant 0 : i32
    %c0_i32_0 = arith.constant 0 : i32
    %c0_i32_1 = arith.constant 0 : i32
    return %c0_i32, %c0_i32_0 : i32, i32
  }
  func.func @transform_5(%arg0: i32) -> (i32, i32) {
    %c0_i32 = arith.constant 0 : i32
    %c0_i32_0 = arith.constant 0 : i32
    %c0_i32_1 = arith.constant 0 : i32
    return %c0_i32, %c0_i32_0 : i32, i32
  }
  func.func @transform_6(%arg0: i32) -> (i32, i32) {
    %c0_i32 = arith.constant 0 : i32
    %c0_i32_0 = arith.constant 0 : i32
    %c0_i32_1 = arith.constant 0 : i32
    return %c0_i32, %c0_i32_0 : i32, i32
  }
  func.func @transform_7(%arg0: i32) -> (i32, i32) {
    %c0_i32 = arith.constant 0 : i32
    %c0_i32_0 = arith.constant 0 : i32
    %c0_i32_1 = arith.constant 0 : i32
    return %c0_i32, %c0_i32_0 : i32, i32
  }
  func.func @transform_8(%arg0: i32) -> (i32, i32, i32) {
    %c0_i32 = arith.constant 0 : i32
    %c0_i32_0 = arith.constant 0 : i32
    %c0_i32_1 = arith.constant 0 : i32
    return %arg0, %c0_i32, %c0_i32_0 : i32, i32, i32
  }
  func.func @transform_9(%arg0: i32) -> (i32, i32, i32) {
    %c0_i32 = arith.constant 0 : i32
    %c0_i32_0 = arith.constant 0 : i32
    %c0_i32_1 = arith.constant 0 : i32
    return %arg0, %c0_i32, %c0_i32_0 : i32, i32, i32
  }
  func.func @transform_10(%arg0: i32) -> (i32, i32, i32) {
    %c0_i32 = arith.constant 0 : i32
    %c0_i32_0 = arith.constant 0 : i32
    %c0_i32_1 = arith.constant 0 : i32
    return %arg0, %c0_i32, %c0_i32_0 : i32, i32, i32
  }
  func.func @transform_11(%arg0: i32) -> (i32, i32, i32) {
    %c0_i32 = arith.constant 0 : i32
    %c0_i32_0 = arith.constant 0 : i32
    %c0_i32_1 = arith.constant 0 : i32
    return %arg0, %c0_i32, %c0_i32_0 : i32, i32, i32
  }
  func.func @transform_12(%arg0: i32) -> (i32, i32, i32) {
    %c0_i32 = arith.constant 0 : i32
    %c0_i32_0 = arith.constant 0 : i32
    %c0_i32_1 = arith.constant 0 : i32
    return %arg0, %c0_i32, %c0_i32_0 : i32, i32, i32
  }
  func.func @transform_13(%arg0: i32) -> (i32, i32, i32) {
    %c0_i32 = arith.constant 0 : i32
    %c0_i32_0 = arith.constant 0 : i32
    %c0_i32_1 = arith.constant 0 : i32
    return %arg0, %c0_i32, %c0_i32_0 : i32, i32, i32
  }
  func.func @transform_14(%arg0: i32) -> (i32, i32, i32) {
    %c0_i32 = arith.constant 0 : i32
    %c0_i32_0 = arith.constant 0 : i32
    %c0_i32_1 = arith.constant 0 : i32
    return %arg0, %c0_i32, %c0_i32_0 : i32, i32, i32
  }
  func.func @transform_15(%arg0: i32) -> (i32, i32, i32) {
    %c0_i32 = arith.constant 0 : i32
    %c0_i32_0 = arith.constant 0 : i32
    %c0_i32_1 = arith.constant 0 : i32
    return %arg0, %c0_i32, %c0_i32_0 : i32, i32, i32
  }
  func.func @transform_16(%arg0: i32) -> (i32, i32, i32) {
    %c0_i32 = arith.constant 0 : i32
    %c0_i32_0 = arith.constant 0 : i32
    %c0_i32_1 = arith.constant 0 : i32
    return %arg0, %c0_i32, %c0_i32_0 : i32, i32, i32
  }
  func.func @transform_17(%arg0: i32) -> (i32, i32, i32) {
    %c0_i32 = arith.constant 0 : i32
    %c0_i32_0 = arith.constant 0 : i32
    %c0_i32_1 = arith.constant 0 : i32
    return %arg0, %c0_i32, %c0_i32_0 : i32, i32, i32
  }
  func.func @transform_18(%arg0: i32) -> (i32, i32, i32) {
    %c0_i32 = arith.constant 0 : i32
    %c0_i32_0 = arith.constant 0 : i32
    %c0_i32_1 = arith.constant 0 : i32
    return %arg0, %c0_i32, %c0_i32_0 : i32, i32, i32
  }
  func.func @transform_19(%arg0: i32) -> (i32, i32, i32) {
    %c0_i32 = arith.constant 0 : i32
    %c0_i32_0 = arith.constant 0 : i32
    %c0_i32_1 = arith.constant 0 : i32
    return %arg0, %c0_i32, %c0_i32_0 : i32, i32, i32
  }
  func.func @transform_20(%arg0: i32) -> (i32, i32, i32) {
    %c0_i32 = arith.constant 0 : i32
    %c0_i32_0 = arith.constant 0 : i32
    %c0_i32_1 = arith.constant 0 : i32
    return %arg0, %c0_i32, %c0_i32_0 : i32, i32, i32
  }
  func.func @transform_21(%arg0: i32) -> (i32, i32, i32) {
    %c0_i32 = arith.constant 0 : i32
    %c0_i32_0 = arith.constant 0 : i32
    %c0_i32_1 = arith.constant 0 : i32
    return %arg0, %c0_i32, %c0_i32_0 : i32, i32, i32
  }
  func.func @transform_22(%arg0: i32) -> (i32, i32, i32) {
    %c0_i32 = arith.constant 0 : i32
    %c0_i32_0 = arith.constant 0 : i32
    %c0_i32_1 = arith.constant 0 : i32
    return %arg0, %c0_i32, %c0_i32_0 : i32, i32, i32
  }
  func.func @transform_23(%arg0: i32) -> (i32, i32) {
    %c0_i32 = arith.constant 0 : i32
    %c0_i32_0 = arith.constant 0 : i32
    %c0_i32_1 = arith.constant 0 : i32
    return %c0_i32, %c0_i32_0 : i32, i32
  }
  func.func @transform_24(%arg0: i32) -> (i32, i32) {
    %c0_i32 = arith.constant 0 : i32
    %c0_i32_0 = arith.constant 0 : i32
    %c0_i32_1 = arith.constant 0 : i32
    return %c0_i32, %c0_i32_0 : i32, i32
  }
}

</mosaic_0001>

<bundles_post_ra>
// kernel: cartnet_block_forward.1
= control target key start
LH: loop header
LB: loop body
LE: loop exit
PB: predicated region body
PF: predicated region fallthrough
CT: control target
= control target key end

     0   :  { %s3177_s0 = inlined_call_operand.vmem [shape: f32[16,32], index: 0, kind: input, shape index: {}]   ;;  %s3178_s1 = inlined_call_operand.vmem [shape: f32[48,32], index: 1, kind: input, shape index: {}]   ;;  %s3179_s2 = inlined_call_operand.vmem [shape: bf16[48,16], index: 2, kind: input, shape index: {}]   ;;  %s3180_s3 = inlined_call_operand.vmem [shape: bf16[48,16], index: 3, kind: input, shape index: {}]   ;;  %s3181_s4 = inlined_call_operand.vmem [shape: bf16[16,48], index: 4, kind: input, shape index: {}]   ;;  %s3182_s5 = inlined_call_operand.vmem [shape: f32[2,16], index: 5, kind: input, shape index: {}]   ;;  %s3183_s6 = inlined_call_operand.vmem [shape: f32[16,2], index: 6, kind: input, shape index: {}]   ;;  %s3184_s7 = inlined_call_operand.vmem [shape: f32[2,1], index: 7, kind: input, shape index: {}]   ;;  %s3185_s8 = inlined_call_operand.vmem [shape: bf16[2,32,64], index: 8, kind: input, shape index: {}]   ;;  %s3186_s9 = inlined_call_operand.vmem [shape: bf16[2,32,64], index: 9, kind: input, shape index: {}]   ;;  %s3187_s10 = inlined_call_operand.vmem [shape: bf16[2,32,64], index: 10, kind: input, shape index: {}]   ;;  %s3188_s11 = inlined_call_operand.vmem [shape: f32[2,1,64], index: 11, kind: input, shape index: {}]   ;;  %s3189_s12 = inlined_call_operand.vmem [shape: bf16[2,64,32], index: 12, kind: input, shape index: {}]   ;;  %s3190_s13 = inlined_call_operand.vmem [shape: f32[2,1,32], index: 13, kind: input, shape index: {}]   ;;  %s3191_s14 = inlined_call_operand.vmem [shape: bf16[2,64,32], index: 14, kind: input, shape index: {}]   ;;  %s3192_s15 = inlined_call_operand.vmem [shape: f32[2,1,32], index: 15, kind: input, shape index: {}]   ;;  %s3193_s16 = inlined_call_operand.vmem [shape: f32[2,1,32], index: 16, kind: input, shape index: {}]   ;;  %s3194_s17 = inlined_call_operand.vmem [shape: f32[2,1,32], index: 17, kind: input, shape index: {}]   ;;  %s3195_s18 = inlined_call_operand.vmem [shape: f32[2,1,32], index: 18, kind: input, shape index: {}]   ;;  %s3196_s19 = inlined_call_operand.vmem [shape: f32[2,1,32], index: 19, kind: input, shape index: {}]   ;;  %s3197_s20 = inlined_call_operand.vmem [shape: f32[2,1,32], index: 20, kind: input, shape index: {}]   ;;  %s3198_s21 = inlined_call_operand.vmem [shape: f32[2,1,32], index: 21, kind: input, shape index: {}]   ;;  %s3199_s22 = inlined_call_operand.vmem [shape: f32[2,1,32], index: 22, kind: input, shape index: {}]   ;;  %s3200_s23 = inlined_call_operand.hbm [shape: f32[16,32], index: 23, kind: output, shape index: {0}]   ;;  %s3201_s24 = inlined_call_operand.vmem [shape: f32[48,32], index: 24, kind: output, shape index: {1}]  }
   0x1   :  { %3212 = sst [smem:[#allocation10_spill]] %s3177_s0 }
   0x2   :  { %3213 = sst [smem:[#allocation11_spill]] %s3178_s1 }
   0x3   :  { %3214 = sst [smem:[#allocation12_spill]] %s3179_s2 }
   0x4   :  { %3215 = sst [smem:[#allocation13_spill]] %s3180_s3 }
   0x5   :  { %3216 = sst [smem:[#allocation14_spill]] %s3181_s4 }
   0x6   :  { %3217 = sst [smem:[#allocation15_spill]] %s3182_s5 }
   0x7   :  { %3218 = sst [smem:[#allocation16_spill]] %s3183_s6 }
   0x8   :  { %3219 = sst [smem:[#allocation17_spill]] %s3184_s7 }
   0x9   :  { %3220 = sst [smem:[#allocation18_spill]] %s3185_s8 }
   0xa   :  { %3221 = sst [smem:[#allocation19_spill]] %s3186_s9 }
   0xb   :  { %3222 = sst [smem:[#allocation20_spill]] %s3187_s10 }
   0xc   :  { %3223 = sst [smem:[#allocation21_spill]] %s3188_s11 }
   0xd   :  { %3224 = sst [smem:[#allocation22_spill]] %s3189_s12 }
   0xe   :  { %3225 = sst [smem:[#allocation23_spill]] %s3191_s14 }
   0xf   :  { %3226 = sst [smem:[#allocation24_spill]] %s3200_s23 }
  0x10   :  { %3227 = sst [smem:[#allocation25_spill]] %s3201_s24 }
  0x11   :  { %30 = vsyncpa [#allocation5], 0  ;;  %s2669_s5 = smov 0  }
  0x12 LB: > { %3228 = sst [smem:[#allocation7_spill]] %s2536_s5  ;;  %s2675_s26 = sadd.s32 4294967295, %s2536_s5   ;;  %s2536_s5 = sphi %s2669_s5, %s36_s5  }
  0x13   : > { %3229 = sst [smem:[#allocation8_spill]] %s2675_s26  ;;  %p2228_p0 = scmp.ge.s32.totalorder %s2536_s5, 1 }
  0x14   : > { %p776_p1 = scmp.lt.s32.totalorder %s2536_s5, 3 }
  0x16   : > { %p777_p2 = pnand %p2228_p0, %p776_p1 }
  0x18   : > { %780 = sbr.rel (%p777_p2) target bundleno = 1167 (0x48f), region = 112 }
  0x1d   : > { %p887_p3 = scmp.lt.s32.totalorder %s2675_s26, 1  ;;  %s3231_s30 = sld [smem:[#allocation18_spill]] }
  0x1e   : > { %s3232_s9 = sld [smem:[#allocation19_spill]] }
  0x1f   : > { %s2681_s27 = scalar_select %p887_p3, %s2675_s26, 1 }
  0x20   : > { %s3233_s10 = sld [smem:[#allocation20_spill]] }
  0x21   : > { %s2372_s28 = sshll.u32 %s2681_s27, 4  ;;  %s2375_s24 = sshll.u32 %s2681_s27, 5 }
  0x22   : > { %s3234_s12 = sld [smem:[#allocation22_spill]]  ;;  %s929_s0 = scalar_lea.vmem %s3195_s18, %s2681_s27 }
  0x23   : > { %s2691_s3 = scalar_lea.vmem %s3231_s30, %s2372_s28  ;;  %s3236_s14 = sld [smem:[#allocation23_spill]] }
  0x24   : > { %s2696_s4 = scalar_lea.vmem %s3232_s9, %s2372_s28  ;;  %s935_s9 = scalar_lea.vmem %s3197_s20, %s2681_s27 }
  0x25   : > { %s2750_s26 = scalar_lea.vmem %s3199_s22, %s2681_s27  ;;  %s3237_s6 = sld [smem:[#allocation8_spill]] }
  0x26   : > { %s2701_s23 = scalar_lea.vmem %s3233_s10, %s2372_s28 }
  0x28   : > { %s2707_s2 = scalar_lea.vmem %s3234_s12, %s2375_s24  ;;  %s926_s12 = scalar_lea.vmem %s3194_s17, %s2681_s27 }
  0x29   : > { %3235 = sst [smem:[#allocation9_spill]] %s2707_s2  ;;  %s2716_s25 = scalar_lea.vmem %s3236_s14, %s2375_s24 }
  0x2a   : > { %s932_s24 = scalar_lea.vmem %s3196_s19, %s2681_s27 }
  0x2b   : > { %p2239_p4 = scmp.ne.s32.totalorder %s3237_s6, 0 }
  0x2c   : > { %s3238_s7 = sld [smem:[#allocation10_spill]] (!%p2239_p4) }
  0x2d   : > { %946 = sbr.rel (%p2239_p4) target bundleno = 59 (0x3b), region = 116  ;;  %s3239_s8 = sld [smem:[#allocation11_spill]] (!%p2239_p4) }
  0x32   : > { %v947_v0 = vld [vmem:[%s3238_s7] sm:$0xff]  ;;  %vm949_vm0 = vcmask 261120   ;;  %v948_v1 = vld [vmem:[%s3238_s7 + $0x8] sm:$0xff] }
  0x33   : > { %v952_v2 = vld [vmem:[%s3239_s8] sm:$0xff]  ;;  %950 = vst.msk [vmem:[#allocation2] sm:$0xff] %vm949_vm0, %v947_v0  ;;  %v953_v3 = vld [vmem:[%s3239_s8 + $0x8] sm:$0xff]  ;;  %v954_v4 = vld [vmem:[%s3239_s8 + $0x10] sm:$0xff] }
  0x34   : > { %951 = vst.msk [vmem:[#allocation2 + $0x8] sm:$0xff] %vm949_vm0, %v948_v1  ;;  %v955_v5 = vld [vmem:[%s3239_s8 + $0x18] sm:$0xff]  ;;  %v956_v6 = vld [vmem:[%s3239_s8 + $0x20] sm:$0xff]  ;;  %v957_v7 = vld [vmem:[%s3239_s8 + $0x28] sm:$0xff] }
  0x35   : > { %958 = vst.msk [vmem:[#allocation3] sm:$0xff] %vm949_vm0, %v952_v2 }
  0x36   : > { %959 = vst.msk [vmem:[#allocation3 + $0x8] sm:$0xff] %vm949_vm0, %v953_v3 }
  0x37   : > { %960 = vst.msk [vmem:[#allocation3 + $0x10] sm:$0xff] %vm949_vm0, %v954_v4 }
  0x38   : > { %961 = vst.msk [vmem:[#allocation3 + $0x18] sm:$0xff] %vm949_vm0, %v955_v5 }
  0x39   : > { %962 = vst.msk [vmem:[#allocation3 + $0x20] sm:$0xff] %vm949_vm0, %v956_v6 }
  0x3a   : > { %963 = vst.msk [vmem:[#allocation3 + $0x28] sm:$0xff] %vm949_vm0, %v957_v7 }
  0x3b PF: > { %v964_v8 = vld [vmem:[#allocation2] sm:$0xff]  ;;  %v965_v9 = vld [vmem:[#allocation2 + $0x8] sm:$0xff]  ;;  %s3240_s1 = sld [smem:[#allocation12_spill]]  ;;  %vm3211_vm1 = vcmask 130048   ;;  %vm1111_vm2 = vcmask 261120   ;;  %v2396_v54 = vld [vmem:[%s2716_s25 + $0x18] sm:$0xff]  ;;  %s3245_s5 = scalar_lea.vmem %s3190_s13, %s2681_s27 }
  0x3c   : > { %v972_v10 = vpack.c.bf16 %v965_v9, %v964_v8  ;;  %s3241_s29 = sld [smem:[#allocation13_spill]]  ;;  %v2386_v17 = vld [vmem:[%s2696_s4 + $0x8] sm:$0xff]  ;;  %v2385_v20 = vld [vmem:[%s2696_s4] sm:$0xff]  ;;  %v2807_v23 = vld [vmem:[#allocation3] sm:$0xff]  ;;  %vm1414_vm11 = vcmask 523264   ;;  %s3246_s6 = scalar_lea.vmem %s3193_s16, %s2681_s27 }
  0x3d   : > { %v2384_v18 = vld [vmem:[%s2691_s3 + $0x8] sm:$0xff]  ;;  %1127 = vmatpush.bf16.msra.mxu2 %v2386_v17  ;;  %v2383_v21 = vld [vmem:[%s2691_s3] sm:$0xff]  ;;  %v2809_v24 = vld [vmem:[#allocation3 + $0x8] sm:$0xff]  ;;  %s3243_s11 = sld [smem:[#allocation21_spill]]  ;;  %s3247_s4 = scalar_lea.vmem %s3192_s15, %s2681_s27 }
  0x3e   : > { %1014 = vmatpush.bf16.msra.mxu0 %v972_v10  ;;  %1068 = vmatpush.bf16.msra.mxu1 %v972_v10  ;;  %v2388_v19 = vld [vmem:[%s2701_s23 + $0x8] sm:$0xff]  ;;  %v2387_v22 = vld [vmem:[%s2701_s23] sm:$0xff]  ;;  %v973_v25 = vpack.c.bf16 %v2809_v24, %v2807_v23  ;;  %s3242_s23 = sld [smem:[#allocation9_spill]]  ;;  %v2395_v60 = vld [vmem:[%s2716_s25 + $0x10] sm:$0xff]  ;;  %s3265_s2 = scalar_lea.vmem %s3198_s21, %s2681_s27 }
  0x3f   : > { %1172 = vmatpush.bf16.msra.mxu3 %v2384_v18  ;;  %v2814_v26 = vld [vmem:[#allocation3 + $0x10] sm:$0xff]  ;;  %v2816_v27 = vld [vmem:[#allocation3 + $0x18] sm:$0xff]  ;;  %s3258_s30 = sld [smem:[#allocation14_spill]] }
  0x40   : > { %v974_v28 = vpack.c.bf16 %v2816_v27, %v2814_v26  ;;  %v2821_v33 = vld [vmem:[#allocation3 + $0x20] sm:$0xff]  ;;  %v2394_v2 = vld [vmem:[%s2716_s25 + $0x8] sm:$0xff]  ;;  %v2393_v7 = vld [vmem:[%s2716_s25] sm:$0xff]  ;;  %s3256_s25 = sld [smem:[#allocation25_spill]] }
  0x41   : > { %v2377_v11 = vld [vmem:[%s3240_s1] sm:$0xff]  ;;  %v2378_v13 = vld [vmem:[%s3240_s1 + $0x8] sm:$0xff]  ;;  %v2379_v15 = vld [vmem:[%s3240_s1 + $0x10] sm:$0xff]  ;;  %1128 = vmatpush.bf16.msra.mxu2 %v2385_v20  ;;  %s3260_s3 = sld [smem:[#allocation15_spill]] }
  0x42   : > { %v2380_v12 = vld [vmem:[%s3241_s29] sm:$0xff]  ;;  %2252 = vmatmul.msk.bf16.vlgmr.msra.gmra.mxu0 %vm3211_vm1, %v2377_v11  ;;  %v2381_v14 = vld [vmem:[%s3241_s29 + $0x8] sm:$0xff]  ;;  %v2382_v16 = vld [vmem:[%s3241_s29 + $0x10] sm:$0xff]  ;;  %s3264_s10 = sld [smem:[#allocation8_spill]] }
  0x43   : > { %2267 = vmatmul.msk.bf16.vlgmr.msra.gmra.mxu1 %vm3211_vm1, %v2380_v12  ;;  %1221 = vmatpush.bf16.msrb.mxu0 %v2388_v19  ;;  %v2823_v34 = vld [vmem:[#allocation3 + $0x28] sm:$0xff]  ;;  %s3244_s14 = scalar_lea.vmem %s3243_s11, %s2681_s27  ;;  %s2542_s27 = smov 128  }
  0x44   : > { %1173 = vmatpush.bf16.msra.mxu3 %v2383_v21  ;;  %v975_v37 = vpack.c.bf16 %v2823_v34, %v2821_v33  ;;  %v2392_v53 = vld [vmem:[%s3242_s23 + $0x18] sm:$0xff]  ;;  %v2841_v56 = vld [vmem:[%s3244_s14] ss:$0 sm:$0xff]  ;;  %v2391_v59 = vld [vmem:[%s3242_s23 + $0x10] sm:$0xff]  ;;  %s3263_s14 = sld [smem:[#allocation16_spill]] }
  0x45   : > { %1428 = vmatpush.bf16.msrb.mxu1 %v2392_v53  ;;  %1488 = vmatpush.bf16.msrb.mxu2 %v2396_v54  ;;  %v2390_v1 = vld [vmem:[%s3242_s23 + $0x8] sm:$0xff]  ;;  %v2389_v6 = vld [vmem:[%s3242_s23] sm:$0xff]  ;;  %s3259_s23 = sld [smem:[#allocation17_spill]] }
  0x47   : > { %1222 = vmatpush.bf16.msrb.mxu0 %v2387_v22 }
  0x48   : > { %p2403_p5 = scmp.eq.s32.totalorder %s3264_s10, 1 }
  0x49   : > { %1429 = vmatpush.bf16.msrb.mxu1 %v2391_v59  ;;  %1489 = vmatpush.bf16.msrb.mxu2 %v2395_v60 }
  0x4d   : > { %1430 = vmatpush.bf16.msrb.mxu1 %v2390_v1  ;;  %1490 = vmatpush.bf16.msrb.mxu2 %v2394_v2 }
  0x51   : > { %1431 = vmatpush.bf16.msrb.mxu1 %v2389_v6  ;;  %1491 = vmatpush.bf16.msrb.mxu2 %v2393_v7 }
  0x52   : > { %2253 = vmatmul.msk.bf16.gmra.mxu0 %vm3211_vm1, %v2378_v13 }
  0x53   : > { %2268 = vmatmul.msk.bf16.gmra.mxu1 %vm3211_vm1, %v2381_v14 }
  0x62   : > { %2254 = vmatmul.msk.bf16.gmra.mxu0 %vm3211_vm1, %v2379_v15 }
  0x63   : > { %2269 = vmatmul.msk.bf16.gmra.mxu1 %vm3211_vm1, %v2382_v16 }
  0x72   : > { %2300 = vmatmul.msk.bf16.vlgmr.msrb.gmra.mxu0 %vm1111_vm2, %v973_v25 }
  0x82   : > { %2301 = vmatmul.msk.bf16.gmra.mxu0 %vm1111_vm2, %v974_v28 }
  0x92   : > { %2302 = vmatmul.msk.bf16.gmra.mxu0 %vm1111_vm2, %v975_v37 }
  0xbf   : > { %v1016_v29 = vpop.f32.mrf.mxu0 }
  0xc0   : > { %v1070_v30 = vpop.f32.mrf.mxu1 }
  0xc7   : > { %v1018_v31 = vpop.f32.mrf.mxu0 }
  0xc8   : > { %v1072_v32 = vpop.f32.mrf.mxu1  ;;  %v1085_v35 = vpack.c.bf16 %v1018_v31, %v1016_v29 }
  0xc9   : > { %v1092_v36 = vpack.c.bf16 %v1072_v32, %v1070_v30 }
  0xca   : > { %2289 = vmatmul.msk.bf16.vlgmr.msra.gmra.mxu3 %vm1111_vm2, %v1085_v35 }
  0xcb   : > { %2278 = vmatmul.msk.bf16.vlgmr.msra.gmra.mxu2 %vm1111_vm2, %v1092_v36 }
  0xcf   : > { %v1021_v38 = vpop.f32.mrf.mxu0 }
  0xd0   : > { %v1075_v39 = vpop.f32.mrf.mxu1 }
  0xd7   : > { %v1023_v40 = vpop.f32.mrf.mxu0 }
  0xd8   : > { %v1077_v41 = vpop.f32.mrf.mxu1  ;;  %v1086_v42 = vpack.c.bf16 %v1023_v40, %v1021_v38 }
  0xd9   : > { %v1093_v43 = vpack.c.bf16 %v1077_v41, %v1075_v39 }
  0xda   : > { %2290 = vmatmul.msk.bf16.gmra.mxu3 %vm1111_vm2, %v1086_v42 }
  0xdb   : > { %2279 = vmatmul.msk.bf16.gmra.mxu2 %vm1111_vm2, %v1093_v43 }
  0xdf   : > { %v1026_v44 = vpop.f32.mrf.mxu0 }
  0xe0   : > { %v1080_v45 = vpop.f32.mrf.mxu1 }
  0xe7   : > { %v1028_v46 = vpop.f32.mrf.mxu0 }
  0xe8   : > { %v1082_v47 = vpop.f32.mrf.mxu1  ;;  %v1087_v48 = vpack.c.bf16 %v1028_v46, %v1026_v44 }
  0xe9   : > { %v1094_v49 = vpack.c.bf16 %v1082_v47, %v1080_v45 }
  0xea   : > { %2291 = vmatmul.msk.bf16.gmra.mxu3 %vm1111_vm2, %v1087_v48 }
  0xeb   : > { %2280 = vmatmul.msk.bf16.gmra.mxu2 %vm1111_vm2, %v1094_v49 }
  0xef   : > { %v1224_v50 = vpop.f32.mrf.mxu0 }
  0xf7   : > { %v1226_v57 = vpop.f32.mrf.mxu0 }
  0xff   : > { %v1229_v5 = vpop.f32.mrf.mxu0 }
 0x107   : > { %v1231_v17 = vpop.f32.mrf.mxu0 }
 0x10f   : > { %v1234_v38 = vpop.f32.mrf.mxu0 }
 0x14d   : > { %v1175_v52 = vpop.f32.mrf.mxu3 }
 0x14e   : > { %v1130_v51 = vpop.f32.mrf.mxu2 }
 0x14f   : > { %v1176_v55 = vadd.f32 %v1175_v52, %v1130_v51 }
 0x151   : > { %v1239_v58 = vadd.f32 %v1224_v50, %v1176_v55 }
 0x153   : > { %v2846_v61 = vadd.f32 %v2841_v56, %v1239_v58 }
 0x155   : > { %v2303_v62 = vmul.f32 -1.442695, %v2846_v61  ;;  %v1177_v0 = vpop.f32.mrf.mxu3 }
 0x156   : > { %v1132_v63 = vpop.f32.mrf.mxu2 }
 0x157   : > { %2430 = vpow2.f32 %v2303_v62  ;;  %v1178_v3 = vadd.f32 %v1177_v0, %v1132_v63 }
 0x159   : > { %v1240_v4 = vadd.f32 %v1226_v57, %v1178_v3 }
 0x15b   : > { %v2854_v8 = vadd.f32 %v2841_v56, %v1240_v4 }
 0x15d   : > { %v2431_v9 = vpop.eup %2430  ;;  %v2304_v10 = vmul.f32 -1.442695, %v2854_v8  ;;  %v1180_v13 = vpop.f32.mrf.mxu3 }
 0x15e   : > { %v1273_v11 = vadd.f32 1.0, %v2431_v9  ;;  %v1135_v12 = vpop.f32.mrf.mxu2  ;;  %v1236_v9 = vpop.f32.mrf.mxu0 }
 0x15f   : > { %2432 = vpow2.f32 %v2304_v10  ;;  %v1181_v14 = vadd.f32 %v1180_v13, %v1135_v12 }
 0x160   : > { %2434 = vrcp.f32 %v1273_v11  ;;  %v1290_v44 = vand.u32 2147483648, %v1273_v11  ;;  %vm1284_vm4 = vweird.f32 %v1273_v11  ;;  %v1288_v46 = vand.u32 2147483647, %v1273_v11 }
 0x161   : > { %v1241_v15 = vadd.f32 %v1229_v5, %v1181_v14 }
 0x162   : > { %v1291_v52 = vor.u32 1.1754944e-38, %v1290_v44  ;;  %vm1289_vm7 = vcmp.eq.f32.partialorder %v1288_v46, 8.507059e+37 }
 0x163   : > { %v2858_v16 = vadd.f32 %v2841_v56, %v1241_v15 }
 0x165   : > { %v2433_v18 = vpop.eup %2432  ;;  %v2305_v19 = vmul.f32 -1.442695, %v2858_v16  ;;  %v1182_v25 = vpop.f32.mrf.mxu3 }
 0x166   : > { %v2435_v20 = vpop.eup %2434  ;;  %v1274_v21 = vadd.f32 1.0, %v2433_v18  ;;  %v1137_v22 = vpop.f32.mrf.mxu2 }
 0x167   : > { %v1280_v28 = vmul.f32 %v2435_v20, %v1273_v11  ;;  %2436 = vpow2.f32 %v2305_v19  ;;  %v1183_v29 = vadd.f32 %v1182_v25, %v1137_v22  ;;  %vm1285_vm3 = vweird.f32 %v2435_v20 }
 0x168   : > { %2438 = vrcp.f32 %v1274_v21  ;;  %vm1286_vm5 = vmor %vm1284_vm4, %vm1285_vm3  ;;  %v1305_v50 = vand.u32 2147483648, %v1274_v21  ;;  %v1303_v54 = vand.u32 2147483647, %v1274_v21  ;;  %vm1299_vm8 = vweird.f32 %v1274_v21 }
 0x169   : > { %v1281_v30 = vsub.f32 1.0, %v1280_v28  ;;  %v1242_v31 = vadd.f32 %v1231_v17, %v1183_v29 }
 0x16a   : > { %v1306_v62 = vor.u32 1.1754944e-38, %v1305_v50  ;;  %vm1304_vm10 = vcmp.eq.f32.partialorder %v1303_v54, 8.507059e+37 }
 0x16b   : > { %v1282_v32 = vmul.f32 %v2435_v20, %v1281_v30  ;;  %v2862_v35 = vadd.f32 %v2841_v56, %v1242_v31 }
 0x16d   : > { %v2437_v36 = vpop.eup %2436  ;;  %v2306_v37 = vmul.f32 -1.442695, %v2862_v35  ;;  %v1283_v40 = vadd.f32 %v2435_v20, %v1282_v32  ;;  %v1185_v43 = vpop.f32.mrf.mxu3 }
 0x16e   : > { %v2439_v39 = vpop.eup %2438  ;;  %v2865_v41 = vadd.f32 1.0, %v2437_v36  ;;  %v1140_v42 = vpop.f32.mrf.mxu2 }
 0x16f   : > { %v1295_v45 = vmul.f32 %v2439_v39, %v1274_v21  ;;  %2440 = vpow2.f32 %v2306_v37  ;;  %v1186_v47 = vadd.f32 %v1185_v43, %v1140_v42  ;;  %v1287_v49 = vsel %vm1286_vm5, %v2435_v20, %v1283_v40 }
 0x170   : > { %2442 = vrcp.f32 %v2865_v41  ;;  %vm1300_vm6 = vweird.f32 %v2439_v39  ;;  %v1292_v58 = vsel %vm1289_vm7, %v1291_v52, %v1287_v49  ;;  %v1320_v21 = vand.u32 2147483648, %v2865_v41 }
 0x171   : > { %v1296_v48 = vsub.f32 1.0, %v1295_v45  ;;  %v1243_v51 = vadd.f32 %v1234_v38, %v1186_v47  ;;  %vm1301_vm9 = vmor %vm1299_vm8, %vm1300_vm6  ;;  %v1369_v6 = vmul.f32 %v1292_v58, %v2846_v61  ;;  %vm1314_vm13 = vweird.f32 %v2865_v41 }
 0x172   : > { %v1321_v31 = vor.u32 1.1754944e-38, %v1320_v21 }
 0x173   : > { %v1297_v53 = vmul.f32 %v2439_v39, %v1296_v48  ;;  %v2869_v55 = vadd.f32 %v2841_v56, %v1243_v51 }
 0x175   : > { %v2441_v57 = vpop.eup %2440  ;;  %v1298_v59 = vadd.f32 %v2439_v39, %v1297_v53  ;;  %v2307_v0 = vmul.f32 -1.442695, %v2869_v55  ;;  %v1187_v2 = vpop.f32.mrf.mxu3 }
 0x176   : > { %v2443_v60 = vpop.eup %2442  ;;  %v1276_v63 = vadd.f32 1.0, %v2441_v57  ;;  %v1142_v1 = vpop.f32.mrf.mxu2 }
 0x177   : > { %v1302_v3 = vsel %vm1301_vm9, %v2439_v39, %v1298_v59  ;;  %v1188_v4 = vadd.f32 %v1187_v2, %v1142_v1  ;;  %v1310_v5 = vmul.f32 %v2443_v60, %v2865_v41  ;;  %vm1315_vm12 = vweird.f32 %v2443_v60 }
 0x178   : > { %v1307_v7 = vsel %vm1304_vm10, %v1306_v62, %v1302_v3  ;;  %2444 = vrcp.f32 %v1276_v63  ;;  %vm1316_vm14 = vmor %vm1314_vm13, %vm1315_vm12  ;;  %v1335_v25 = vand.u32 2147483648, %v1276_v63  ;;  %v1333_v30 = vand.u32 2147483647, %v1276_v63 }
 0x179   : > { %v1370_v10 = vmul.f32 %v1307_v7, %v2854_v8  ;;  %2446 = vpow2.f32 %v2307_v0  ;;  %v1244_v11 = vadd.f32 %v1236_v9, %v1188_v4  ;;  %v1311_v12 = vsub.f32 1.0, %v1310_v5 }
 0x17a   : > { %vm1329_vm3 = vweird.f32 %v1276_v63  ;;  %v1336_v39 = vor.u32 1.1754944e-38, %v1335_v25  ;;  %vm1334_vm5 = vcmp.eq.f32.partialorder %v1333_v30, 8.507059e+37 }
 0x17b   : > { %v2876_v13 = vadd.f32 %v2841_v56, %v1244_v11  ;;  %v1375_v14 = vpack.c.bf16 %v1370_v10, %v1369_v6  ;;  %v1312_v15 = vmul.f32 %v2443_v60, %v1311_v12  ;;  %v1318_v56 = vand.u32 2147483647, %v2865_v41  ;;  %v2421_v10 = vld [vmem:[%s3245_s5] ss:$0 sm:$0xff] }
 0x17d   : > { %v2308_v17 = vmul.f32 -1.442695, %v2876_v13  ;;  %2325 = vmatmul.msk.bf16.vlgmr.msrb.gmra.mxu1 %vm1414_vm11, %v1375_v14  ;;  %2344 = vmatmul.msk.bf16.vlgmr.msrb.gmra.mxu2 %vm1414_vm11, %v1375_v14  ;;  %v1313_v19 = vadd.f32 %v2443_v60, %v1312_v15  ;;  %vm1319_vm0 = vcmp.eq.f32.partialorder %v1318_v56, 8.507059e+37 }
 0x17e   : > { %v2445_v61 = vpop.eup %2444 }
 0x17f   : > { %v2447_v18 = vpop.eup %2446  ;;  %2448 = vpow2.f32 %v2308_v17  ;;  %v1325_v8 = vmul.f32 %v2445_v61, %v1276_v63  ;;  %v1317_v28 = vsel %vm1316_vm14, %v2443_v60, %v1313_v19  ;;  %vm1330_vm15 = vweird.f32 %v2445_v61 }
 0x180   : > { %v1277_v20 = vadd.f32 1.0, %v2447_v18  ;;  %v1322_v38 = vsel %vm1319_vm0, %v1321_v31, %v1317_v28  ;;  %vm1331_vm4 = vmor %vm1329_vm3, %vm1330_vm15 }
 0x181   : > { %v1326_v22 = vsub.f32 1.0, %v1325_v8  ;;  %v1371_v43 = vmul.f32 %v1322_v38, %v2858_v16 }
 0x182   : > { %2450 = vrcp.f32 %v1277_v20  ;;  %v1350_v52 = vand.u32 2147483648, %v1277_v20  ;;  %vm1344_vm7 = vweird.f32 %v1277_v20  ;;  %v1348_v53 = vand.u32 2147483647, %v1277_v20 }
 0x183   : > { %v1327_v29 = vmul.f32 %v2445_v61, %v1326_v22 }
 0x184   : > { %v1351_v59 = vor.u32 1.1754944e-38, %v1350_v52  ;;  %vm1349_vm10 = vcmp.eq.f32.partialorder %v1348_v53, 8.507059e+37 }
 0x185   : > { %v2449_v32 = vpop.eup %2448  ;;  %v1328_v36 = vadd.f32 %v2445_v61, %v1327_v29 }
 0x186   : > { %v1278_v37 = vadd.f32 1.0, %v2449_v32 }
 0x187   : > { %v1332_v40 = vsel %vm1331_vm4, %v2445_v61, %v1328_v36 }
 0x188   : > { %v2451_v41 = vpop.eup %2450  ;;  %2452 = vrcp.f32 %v1278_v37  ;;  %v1337_v42 = vsel %vm1334_vm5, %v1336_v39, %v1332_v40  ;;  %v1365_v16 = vand.u32 2147483648, %v1278_v37  ;;  %v1363_v58 = vand.u32 2147483647, %v1278_v37 }
 0x189   : > { %v1372_v44 = vmul.f32 %v1337_v42, %v2862_v35  ;;  %v1340_v45 = vmul.f32 %v2451_v41, %v1277_v20  ;;  %vm1345_vm6 = vweird.f32 %v2451_v41  ;;  %vm1359_vm12 = vweird.f32 %v1278_v37 }
 0x18a   : > { %vm1346_vm8 = vmor %vm1344_vm7, %vm1345_vm6  ;;  %v1366_v63 = vor.u32 1.1754944e-38, %v1365_v16  ;;  %vm1364_vm14 = vcmp.eq.f32.partialorder %v1363_v58, 8.507059e+37 }
 0x18b   : > { %v1376_v46 = vpack.c.bf16 %v1372_v44, %v1371_v43  ;;  %v1341_v47 = vsub.f32 1.0, %v1340_v45 }
 0x18d   : > { %2326 = vmatmul.msk.bf16.gmra.mxu1 %vm1414_vm11, %v1376_v46  ;;  %2345 = vmatmul.msk.bf16.gmra.mxu2 %vm1414_vm11, %v1376_v46  ;;  %v1342_v48 = vmul.f32 %v2451_v41, %v1341_v47 }
 0x18e   : > { %v2453_v49 = vpop.eup %2452 }
 0x18f   : > { %v1343_v50 = vadd.f32 %v2451_v41, %v1342_v48  ;;  %v1355_v51 = vmul.f32 %v2453_v49, %v1278_v37  ;;  %vm1360_vm9 = vweird.f32 %v2453_v49 }
 0x190   : > { %vm1361_vm13 = vmor %vm1359_vm12, %vm1360_vm9 }
 0x191   : > { %v1356_v54 = vsub.f32 1.0, %v1355_v51  ;;  %v1347_v57 = vsel %vm1346_vm8, %v2451_v41, %v1343_v50 }
 0x192   : > { %v1352_v62 = vsel %vm1349_vm10, %v1351_v59, %v1347_v57 }
 0x193   : > { %v1357_v35 = vmul.f32 %v2453_v49, %v1356_v54  ;;  %v1373_v2 = vmul.f32 %v1352_v62, %v2869_v55 }
 0x195   : > { %v1358_v60 = vadd.f32 %v2453_v49, %v1357_v35 }
 0x197   : > { %v1362_v0 = vsel %vm1361_vm13, %v2453_v49, %v1358_v60 }
 0x198   : > { %v1367_v1 = vsel %vm1364_vm14, %v1366_v63, %v1362_v0 }
 0x199   : > { %v1374_v3 = vmul.f32 %v1367_v1, %v2876_v13  ;;  %v2538_v13 = vmov 48.0  }
 0x19a   : > { %2454 = vrcp.f32 %v2538_v13 }
 0x19b   : > { %v1377_v4 = vpack.c.bf16 %v1374_v3, %v1373_v2 }
 0x19d   : > { %2327 = vmatmul.msk.bf16.gmra.mxu1 %vm1414_vm11, %v1377_v4  ;;  %2346 = vmatmul.msk.bf16.gmra.mxu2 %vm1414_vm11, %v1377_v4 }
 0x1a0   : > { %v2455_v25 = vpop.eup %2454 }
 0x1a1   : > { %v1526_v40 = vmul.f32 48.0, %v2455_v25  ;;  %vm1530_vm11 = vweird.f32 %v2455_v25 }
 0x1a3   : > { %v1527_v49 = vsub.f32 1.0, %v1526_v40 }
 0x1a5   : > { %v1528_v57 = vmul.f32 %v2455_v25, %v1527_v49 }
 0x1a7   : > { %v1529_v62 = vadd.f32 %v2455_v25, %v1528_v57 }
 0x1a9   : > { %v1531_v4 = vsel %vm1530_vm11, %v2455_v25, %v1529_v62 }
 0x1fa   : > { %v1433_v5 = vpop.f32.mrf.mxu1 }
 0x1fb   : > { %v2899_v12 = vadd.f32 %v2421_v10, %v1433_v5 }
 0x1fd   : > { %v1533_v61 = vmul.f32 %v2899_v12, %v2899_v12  ;;  %v1508_v20 = vsel %vm1111_vm2, %v2899_v12, 0.0 }
 0x1ff   : > { %v1539_v29 = vsel %vm1111_vm2, %v1533_v61, 0.0 }
 0x200   : > { %v2934_v1 = vpop.f32.mrf.mxu2 }
 0x202   : > { %v1435_v6 = vpop.f32.mrf.mxu1 }
 0x203   : > { %v2897_v11 = vadd.f32 %v2421_v10, %v1435_v6 }
 0x205   : > { %v1534_v14 = vmul.f32 %v2897_v11, %v2897_v11  ;;  %v1509_v18 = vsel %vm1111_vm2, %v2897_v11, 0.0 }
 0x206   : > { %v1510_v28 = vadd.f32 %v1509_v18, %v1508_v20 }
 0x207   : > { %v1540_v21 = vsel %vm1111_vm2, %v1534_v14, 0.0 }
 0x208   : > { %v1541_v36 = vadd.f32 %v1540_v21, %v1539_v29 }
 0x20a   : > { %v1438_v7 = vpop.f32.mrf.mxu1 }
 0x20b   : > { %v2901_v55 = vadd.f32 %v2421_v10, %v1438_v7 }
 0x20d   : > { %v1535_v19 = vmul.f32 %v2901_v55, %v2901_v55  ;;  %v1511_v56 = vsel %vm1111_vm2, %v2901_v55, 0.0 }
 0x20e   : > { %v1512_v37 = vadd.f32 %v1511_v56, %v1510_v28 }
 0x20f   : > { %v1542_v30 = vsel %vm1111_vm2, %v1535_v19, 0.0 }
 0x210   : > { %v1543_v41 = vadd.f32 %v1542_v30, %v1541_v36 }
 0x212   : > { %v1440_v9 = vpop.f32.mrf.mxu1 }
 0x213   : > { %v2905_v15 = vadd.f32 %v2421_v10, %v1440_v9 }
 0x215   : > { %v1536_v22 = vmul.f32 %v2905_v15, %v2905_v15  ;;  %v1513_v31 = vsel %vm1111_vm2, %v2905_v15, 0.0 }
 0x216   : > { %v1514_v42 = vadd.f32 %v1513_v31, %v1512_v37 }
 0x217   : > { %v1544_v38 = vsel %vm1111_vm2, %v1536_v22, 0.0 }
 0x218   : > { %v1545_v46 = vadd.f32 %v1544_v38, %v1543_v41 }
 0x21a   : > { %v1443_v17 = vpop.f32.mrf.mxu1 }
 0x21b   : > { %v2913_v8 = vadd.f32 %v2421_v10, %v1443_v17  ;;  %v2936_v17 = vpop.f32.mrf.mxu2 }
 0x21d   : > { %v1537_v32 = vmul.f32 %v2913_v8, %v2913_v8  ;;  %v1515_v39 = vsel %vm1111_vm2, %v2913_v8, 0.0 }
 0x21e   : > { %v1516_v47 = vadd.f32 %v1515_v39, %v1514_v42 }
 0x21f   : > { %v1546_v44 = vsel %vm1111_vm2, %v1537_v32, 0.0  ;;  %v2423_v32 = vld [vmem:[%s3246_s6] ss:$0 sm:$0xff] }
 0x220   : > { %v1547_v51 = vadd.f32 %v1546_v44, %v1545_v46 }
 0x222   : > { %v1445_v43 = vpop.f32.mrf.mxu1 }
 0x223   : > { %v1446_v45 = vadd.f32 %v2421_v10, %v1445_v43  ;;  %v2938_v19 = vpop.f32.mrf.mxu2 }
 0x225   : > { %v1517_v48 = vsel %vm1111_vm2, %v1446_v45, 0.0  ;;  %v1538_v50 = vmul.f32 %v1446_v45, %v1446_v45 }
 0x226   : > { %v1518_v52 = vadd.f32 %v1517_v48, %v1516_v47 }
 0x227   : > { %v1548_v53 = vsel %vm1111_vm2, %v1538_v50, 0.0 }
 0x228   : > { %v1519_v54 = vrot.slane %v1518_v52, 4  ;;  %v1549_v16 = vadd.f32 %v1548_v53, %v1547_v51 }
 0x22a   : > { %v1520_v35 = vadd.f32 %v1519_v54, %v1518_v52  ;;  %v1550_v58 = vrot.slane %v1549_v16, 4 }
 0x22b   : > { %v1500_v36 = vpop.f32.mrf.mxu2 }
 0x22c   : > { %v1521_v59 = vrot.slane %v1520_v35, 2  ;;  %v1551_v60 = vadd.f32 %v1550_v58, %v1549_v16 }
 0x22e   : > { %v1522_v63 = vadd.f32 %v1521_v59, %v1520_v35  ;;  %v1552_v0 = vrot.slane %v1551_v60, 2 }
 0x230   : > { %v1523_v2 = vrot.slane %v1522_v63, 1  ;;  %v1553_v3 = vadd.f32 %v1552_v0, %v1551_v60 }
 0x232   : > { %v1524_v5 = vadd.f32 %v1523_v2, %v1522_v63  ;;  %v1554_v6 = vrot.slane %v1553_v3, 1 }
 0x233   : > { %v1503_v59 = vpop.f32.mrf.mxu2 }
 0x234   : > { %v1532_v7 = vmul.f32 %v1531_v4, %v1524_v5  ;;  %v1555_v9 = vadd.f32 %v1554_v6, %v1553_v3 }
 0x236   : > { %v1556_v10 = vmul.f32 %v1555_v9, %v1531_v4  ;;  %v1557_v13 = vmul.f32 %v1532_v7, %v1532_v7  ;;  %v1559_v28 = vsub.f32 %v2899_v12, %v1532_v7  ;;  %v1560_v29 = vsub.f32 %v2897_v11, %v1532_v7  ;;  %v2424_v11 = vld [vmem:[%s926_s12] ss:$0 sm:$0xff] }
 0x237   : > { %v1561_v30 = vsub.f32 %v2901_v55, %v1532_v7  ;;  %v1562_v31 = vsub.f32 %v2905_v15, %v1532_v7  ;;  %v1563_v37 = vsub.f32 %v2913_v8, %v1532_v7  ;;  %v1564_v38 = vsub.f32 %v1446_v45, %v1532_v7  ;;  %v2967_v7 = vld [vmem:[%s3247_s4] ss:$0 sm:$0xff]  ;;  %s3266_s4 = sld [smem:[#allocation24_spill]] }
 0x238   : > { %v1558_v14 = vsub.f32 %v1556_v10, %v1557_v13  ;;  %v2973_v13 = vadd.f32 %v2967_v7, %v2938_v19 }
 0x23a   : > { %v1565_v61 = vadd.f32 1e-05, %v1558_v14  ;;  %v2976_v14 = vadd.f32 %v2967_v7, %v1500_v36 }
 0x23b   : > { %v1505_v9 = vpop.f32.mrf.mxu2 }
 0x23c   : > { %2456 = vrsqrt.f32 %v1565_v61  ;;  %vm1572_vm0 = vweird.f32 %v1565_v61 }
 0x23d   : > { %s2038_s11 = sshll.u32 %s3266_s4, 4  ;;  %s2039_s11 = int_to_ptr.hbm [resolvable:$true] %s2038_s11 }
 0x242   : > { %v2457_v18 = vpop.eup %2456 }
 0x243   : > { %v1567_v20 = vmul.f32 %v2457_v18, %v1565_v61  ;;  %vm1573_vm15 = vweird.f32 %v2457_v18  ;;  %v2979_v61 = vadd.f32 %v2967_v7, %v1503_v59 }
 0x244   : > { %vm1574_vm3 = vmor %vm1572_vm0, %vm1573_vm15 }
 0x245   : > { %v1568_v21 = vmul.f32 %v2457_v18, %v1567_v20 }
 0x247   : > { %v1569_v56 = vmul.f32 0.5, %v1568_v21 }
 0x249   : > { %v1570_v22 = vsub.f32 1.5, %v1569_v56 }
 0x24b   : > { %v1571_v25 = vmul.f32 %v2457_v18, %v1570_v22 }
 0x24d   : > { %v1575_v39 = vsel %vm1574_vm3, %v2457_v18, %v1571_v25  ;;  %v2989_v25 = vadd.f32 %v2967_v7, %v1505_v9 }
 0x24e   : > { %v1576_v40 = vmul.f32 %v1575_v39, %v1559_v28  ;;  %v1577_v41 = vmul.f32 %v1575_v39, %v1560_v29  ;;  %v1578_v12 = vmul.f32 %v1575_v39, %v1561_v30  ;;  %v1579_v42 = vmul.f32 %v1575_v39, %v1562_v31 }
 0x24f   : > { %v1580_v55 = vmul.f32 %v1575_v39, %v1563_v37  ;;  %v1581_v15 = vmul.f32 %v1575_v39, %v1564_v38 }
 0x250   : > { %v1588_v43 = vmul.f32 %v2423_v32, %v1578_v12  ;;  %v1589_v44 = vmul.f32 %v2423_v32, %v1579_v42  ;;  %v1586_v46 = vmul.f32 %v2423_v32, %v1576_v40  ;;  %v1587_v47 = vmul.f32 %v2423_v32, %v1577_v41 }
 0x251   : > { %v1591_v48 = vmul.f32 %v2423_v32, %v1581_v15  ;;  %v1590_v49 = vmul.f32 %v2423_v32, %v1580_v55 }
 0x252   : > { %v1598_v8 = vadd.f32 %v2424_v11, %v1588_v43  ;;  %v1599_v45 = vadd.f32 %v2424_v11, %v1589_v44  ;;  %v1596_v50 = vadd.f32 %v2424_v11, %v1586_v46  ;;  %v1597_v54 = vadd.f32 %v2424_v11, %v1587_v47 }
 0x253   : > { %v1601_v51 = vadd.f32 %v2424_v11, %v1591_v48  ;;  %v1600_v52 = vadd.f32 %v2424_v11, %v1590_v49 }
 0x254   : > { %v2349_v53 = vmul.f32 -1.442695, %v1598_v8  ;;  %v2350_v35 = vmul.f32 -1.442695, %v1599_v45  ;;  %v2347_v58 = vmul.f32 -1.442695, %v1596_v50 }
 0x255   : > { %v2352_v16 = vmul.f32 -1.442695, %v1601_v51  ;;  %v2351_v57 = vmul.f32 -1.442695, %v1600_v52  ;;  %v2348_v60 = vmul.f32 -1.442695, %v1597_v54 }
 0x256   : > { %2458 = vpow2.f32 %v2349_v53 }
 0x257   : > { %2460 = vpow2.f32 %v2352_v16 }
 0x258   : > { %2462 = vpow2.f32 %v2351_v57 }
 0x259   : > { %2464 = vpow2.f32 %v2350_v35 }
 0x25a   : > { %2466 = vpow2.f32 %v2347_v58 }
 0x25b   : > { %2468 = vpow2.f32 %v2348_v60 }
 0x25c   : > { %v2459_v62 = vpop.eup %2458 }
 0x25d   : > { %v2461_v63 = vpop.eup %2460  ;;  %v2955_v0 = vadd.f32 1.0, %v2459_v62 }
 0x25e   : > { %v2463_v2 = vpop.eup %2462  ;;  %v2957_v3 = vadd.f32 1.0, %v2461_v63 }
 0x25f   : > { %v2465_v4 = vpop.eup %2464  ;;  %v2959_v5 = vadd.f32 1.0, %v2463_v2  ;;  %2470 = vrcp.f32 %v2955_v0  ;;  %v1665_v56 = vand.u32 2147483647, %v2955_v0  ;;  %vm1661_vm4 = vweird.f32 %v2955_v0 }
 0x260   : > { %v2467_v6 = vpop.eup %2466  ;;  %2472 = vrcp.f32 %v2957_v3  ;;  %v2981_v18 = vadd.f32 1.0, %v2465_v4  ;;  %v1710_v20 = vand.u32 2147483647, %v2957_v3  ;;  %v1712_v21 = vand.u32 2147483648, %v2957_v3 }
 0x261   : > { %2474 = vrcp.f32 %v2959_v5  ;;  %v2469_v10 = vpop.eup %2468  ;;  %v2986_v22 = vadd.f32 1.0, %v2467_v6  ;;  %v1695_v19 = vand.u32 2147483647, %v2959_v5  ;;  %v1697_v29 = vand.u32 2147483648, %v2959_v5 }
 0x262   : > { %2476 = vrcp.f32 %v2981_v18  ;;  %v1667_v30 = vand.u32 2147483648, %v2955_v0  ;;  %v2996_v31 = vadd.f32 1.0, %v2469_v10  ;;  %vm1706_vm5 = vweird.f32 %v2957_v3 }
 0x263   : > { %2478 = vrcp.f32 %v2986_v22  ;;  %vm1691_vm6 = vweird.f32 %v2959_v5  ;;  %v1682_v37 = vand.u32 2147483648, %v2981_v18  ;;  %vm3004_vm7 = vcmp.eq.f32.partialorder %v1710_v20, 8.507059e+37 }
 0x264   : > { %v1713_v41 = vor.u32 1.1754944e-38, %v1712_v21  ;;  %vm3008_vm8 = vcmp.eq.f32.partialorder %v1665_v56, 8.507059e+37  ;;  %v1680_v42 = vand.u32 2147483647, %v2981_v18  ;;  %vm3014_vm9 = vcmp.eq.f32.partialorder %v1695_v19, 8.507059e+37 }
 0x265   : > { %v2471_v28 = vpop.eup %2470  ;;  %2480 = vrcp.f32 %v2996_v31  ;;  %v1698_v44 = vor.u32 1.1754944e-38, %v1697_v29  ;;  %v1668_v46 = vor.u32 1.1754944e-38, %v1667_v30  ;;  %vm1676_vm10 = vweird.f32 %v2981_v18 }
 0x266   : > { %v2473_v32 = vpop.eup %2472  ;;  %v1657_v36 = vmul.f32 %v2471_v28, %v2955_v0  ;;  %vm1662_vm12 = vweird.f32 %v2471_v28  ;;  %v1683_v8 = vor.u32 1.1754944e-38, %v1682_v37  ;;  %vm3023_vm14 = vcmp.eq.f32.partialorder %v1680_v42, 8.507059e+37 }
 0x267   : > { %v2475_v38 = vpop.eup %2474  ;;  %v1702_v39 = vmul.f32 %v2473_v32, %v2957_v3  ;;  %vm1707_vm13 = vweird.f32 %v2473_v32  ;;  %v1635_v53 = vand.u32 2147483647, %v2986_v22  ;;  %vm1663_vm0 = vmor %vm1661_vm4, %vm1662_vm12  ;;  %v1637_v59 = vand.u32 2147483648, %v2986_v22 }
 0x268   : > { %v1687_v11 = vmul.f32 %v2475_v38, %v2959_v5  ;;  %v1658_v15 = vsub.f32 1.0, %v1657_v36  ;;  %v2477_v47 = vpop.eup %2476  ;;  %vm1692_vm11 = vweird.f32 %v2475_v38  ;;  %v1650_v60 = vand.u32 2147483647, %v2996_v31  ;;  %vm1708_vm3 = vmor %vm1706_vm5, %vm1707_vm13 }
 0x269   : > { %v1703_v43 = vsub.f32 1.0, %v1702_v39  ;;  %v3020_v45 = vpop.eup %2478  ;;  %v1672_v51 = vmul.f32 %v2477_v47, %v2981_v18  ;;  %vm1677_vm1 = vweird.f32 %v2477_v47  ;;  %vm1693_vm15 = vmor %vm1691_vm6, %vm1692_vm11  ;;  %v1652_v36 = vand.u32 2147483648, %v2996_v31 }
 0x26a   : > { %v1688_v48 = vsub.f32 1.0, %v1687_v11  ;;  %v1659_v49 = vmul.f32 %v2471_v28, %v1658_v15  ;;  %v1627_v57 = vmul.f32 %v3020_v45, %v2986_v22  ;;  %vm1632_vm4 = vweird.f32 %v3020_v45  ;;  %vm1678_vm5 = vmor %vm1676_vm10, %vm1677_vm1 }
 0x26b   : > { %v1704_v50 = vmul.f32 %v2473_v32, %v1703_v43  ;;  %v1673_v58 = vsub.f32 1.0, %v1672_v51  ;;  %v2481_v62 = vpop.eup %2480  ;;  %vm3257_vm1 = vweird.f32 %v2986_v22  ;;  %v1638_v40 = vor.u32 1.1754944e-38, %v1637_v59 }
 0x26c   : > { %v1689_v54 = vmul.f32 %v2475_v38, %v1688_v48  ;;  %v1660_v16 = vadd.f32 %v2471_v28, %v1659_v49  ;;  %v1628_v4 = vsub.f32 1.0, %v1627_v57  ;;  %v1642_v10 = vmul.f32 %v2481_v62, %v2996_v31 }
 0x26d   : > { %v1705_v35 = vadd.f32 %v2473_v32, %v1704_v50  ;;  %v1674_v9 = vmul.f32 %v2477_v47, %v1673_v58  ;;  %vm1647_vm6 = vweird.f32 %v2481_v62  ;;  %vm1651_vm12 = vcmp.eq.f32.partialorder %v1650_v60, 8.507059e+37 }
 0x26e   : > { %v1690_v63 = vadd.f32 %v2475_v38, %v1689_v54  ;;  %v1664_v2 = vsel %vm1663_vm0, %v2471_v28, %v1660_v16  ;;  %v1653_v22 = vor.u32 1.1754944e-38, %v1652_v36  ;;  %vm1732_vm13 = vcmask 392192  }
 0x26f   : > { %v1709_v6 = vsel %vm1708_vm3, %v2473_v32, %v1705_v35  ;;  %v1669_v0 = vsel %vm3008_vm8, %v1668_v46, %v1664_v2  ;;  %v1675_v28 = vadd.f32 %v2477_v47, %v1674_v9  ;;  %v1643_v32 = vsub.f32 1.0, %v1642_v10 }
 0x270   : > { %v1714_v20 = vsel %vm3004_vm7, %v1713_v41, %v1709_v6  ;;  %v1694_v3 = vsel %vm1693_vm15, %v2475_v38, %v1690_v63  ;;  %v1852_v21 = vadd.f32 %v1669_v0, %v2814_v26  ;;  %v1629_v26 = vmul.f32 %v3020_v45, %v1628_v4  ;;  %vm1633_vm7 = vmor %vm3257_vm1, %vm1632_vm4 }
 0x271   : > { %v1721_v56 = vmul.f32 %v1714_v20, %v2989_v25  ;;  %v1855_v19 = vadd.f32 %v1714_v20, %v2823_v34  ;;  %v1699_v5 = vsel %vm3014_vm9, %v1698_v44, %v1694_v3  ;;  %v1679_v34 = vsel %vm1678_vm5, %v2477_v47, %v1675_v28 }
 0x272   : > { %v1720_v29 = vmul.f32 %v1699_v5, %v2979_v61  ;;  %v1854_v30 = vadd.f32 %v1699_v5, %v2821_v33  ;;  %2019 = vst.msk [vmem:[#allocation3 + $0x10] sm:$0xff] %vm1111_vm2, %v1852_v21  ;;  %v1718_v25 = vmul.f32 %v1669_v0, %v2973_v13  ;;  %v1684_v61 = vsel %vm3023_vm14, %v1683_v8, %v1679_v34 }
 0x273   : > { %2022 = vst.msk [vmem:[#allocation3 + $0x28] sm:$0xff] %vm1111_vm2, %v1855_v19  ;;  %v1630_v18 = vadd.f32 %v3020_v45, %v1629_v26  ;;  %v1644_v37 = vmul.f32 %v2481_v62, %v1643_v32  ;;  %v1494_v38 = vadd.f32 %v2967_v7, %v2934_v1  ;;  %v1719_v13 = vmul.f32 %v1684_v61, %v2976_v14 }
 0x274   : > { %2030 = vst.msk [vmem:[%s3256_s25 + $0x28] sm:$0xff] %vm1111_vm2, %v1855_v19  ;;  %v1724_v33 = vpack.c.bf16 %v1721_v56, %v1720_v29  ;;  %v1853_v39 = vadd.f32 %v1684_v61, %v2816_v27  ;;  %vm1636_vm8 = vcmp.eq.f32.partialorder %v1635_v53, 8.507059e+37  ;;  %vm1646_vm9 = vweird.f32 %v2996_v31 }
 0x275   : > { %2021 = vst.msk [vmem:[#allocation3 + $0x20] sm:$0xff] %vm1111_vm2, %v1854_v30  ;;  %v1634_v1 = vsel %vm1633_vm7, %v3020_v45, %v1630_v18  ;;  %v1645_v41 = vadd.f32 %v2481_v62, %v1644_v37  ;;  %v1496_v27 = vadd.f32 %v2967_v7, %v2936_v17  ;;  %vm1648_vm10 = vmor %vm1646_vm9, %vm1647_vm6  ;;  %v1723_v12 = vpack.c.bf16 %v1719_v13, %v1718_v25 }
 0x276   : > { %1741 = vmatpush.bf16.msrb.mxu3 %v1724_v33  ;;  %2029 = vst.msk [vmem:[%s3256_s25 + $0x20] sm:$0xff] %vm1111_vm2, %v1854_v30  ;;  %v1639_v14 = vsel %vm1636_vm8, %v1638_v40, %v1634_v1  ;;  %v2425_v33 = vld [vmem:[%s929_s0] ss:$0 sm:$0xff] }
 0x277   : > { %2020 = vst.msk [vmem:[#allocation3 + $0x18] sm:$0xff] %vm1111_vm2, %v1853_v39  ;;  %v1649_v42 = vsel %vm1648_vm10, %v2481_v62, %v1645_v41  ;;  %v1716_v11 = vmul.f32 %v1639_v14, %v1494_v38  ;;  %v1850_v31 = vadd.f32 %v1639_v14, %v2807_v23  ;;  %v2397_v23 = vld [vmem:[%s3258_s30] sm:$0xff]  ;;  %vm3261_vm10 = vcmask 130048  }
 0x278   : > { %2027 = vst.msk [vmem:[%s3256_s25 + $0x10] sm:$0xff] %vm1111_vm2, %v1852_v21  ;;  %v1654_v17 = vsel %vm1651_vm12, %v1653_v22, %v1649_v42  ;;  %v2426_v38 = vld [vmem:[%s932_s24] ss:$0 sm:$0xff]  ;;  %vm3262_vm12 = vmmov %vm3261_vm10 }
 0x279   : > { %2028 = vst.msk [vmem:[%s3256_s25 + $0x18] sm:$0xff] %vm1111_vm2, %v1853_v39  ;;  %v1717_v7 = vmul.f32 %v1654_v17, %v1496_v27  ;;  %v1851_v55 = vadd.f32 %v1654_v17, %v2809_v24  ;;  %v2539_v24 = vmov 16.0  }
 0x27a   : > { %1742 = vmatpush.bf16.msrb.mxu3 %v1723_v12  ;;  %2017 = vst.msk [vmem:[#allocation3] sm:$0xff] %vm1111_vm2, %v1850_v31  ;;  %2482 = vrcp.f32 %v2539_v24 }
 0x27b   : > { %2025 = vst.msk [vmem:[%s3256_s25] sm:$0xff] %vm1111_vm2, %v1850_v31  ;;  %v1722_v15 = vpack.c.bf16 %v1717_v7, %v1716_v11  ;;  %v1856_v11 = vld [vmem:[%s3259_s23] sm:$0x3]  ;;  %v2540_v31 = vmov 0   ;;  %s2541_s23 = smov [#allocation4]  }
 0x27c   : > { %2018 = vst.msk [vmem:[#allocation3 + $0x8] sm:$0xff] %vm1111_vm2, %v1851_v55  ;;  %2419 = vset.pattern.permute.xlu0 %v2540_v31  ;;  %s2036_s24 = sshll.u32 %s2541_s23, 4  ;;  %s2037_s24 = int_to_ptr.vmem [resolvable:$true] %s2036_s24 }
 0x27d   : > { %2026 = vst.msk [vmem:[%s3256_s25 + $0x8] sm:$0xff] %vm1111_vm2, %v1851_v55  ;;  %1883 = vperm.xlu0 %2419, %v1856_v11  }
 0x27e   : > { %1743 = vmatpush.bf16.msrb.mxu3 %v1722_v15 }
 0x280   : > { %v2483_v44 = vpop.eup %2482 }
 0x281   : > { %2357 = vmatmul.msk.bf16.vlgmr.msrb.gmra.mxu3 %vm1732_vm13, %v2397_v23  ;;  %v1760_v46 = vmul.f32 16.0, %v2483_v44  ;;  %vm1764_vm14 = vweird.f32 %v2483_v44  ;;  %vm1933_vm13 = vcmask 1041408  }
 0x283   : > { %v1761_v45 = vsub.f32 1.0, %v1760_v46 }
 0x285   : > { %v1762_v57 = vmul.f32 %v2483_v44, %v1761_v45 }
 0x287   : > { %v1763_v62 = vadd.f32 %v2483_v44, %v1762_v57 }
 0x289   : > { %v1765_v0 = vsel %vm1764_vm14, %v2483_v44, %v1763_v62  ;;  %vm1926_vm14 = vcmask 15360  }
 0x304   : > { %v1745_v43 = vpop.f32.mrf.mxu3 }
 0x305   : > { %v1767_v47 = vmul.f32 %v1745_v43, %v1745_v43  ;;  %v1750_v49 = vsel %vm1111_vm2, %v1745_v43, 0.0 }
 0x307   : > { %v1769_v52 = vsel %vm1111_vm2, %v1767_v47, 0.0 }
 0x30c   : > { %v1747_v48 = vpop.f32.mrf.mxu3 }
 0x30d   : > { %v1751_v8 = vsel %vm1111_vm2, %v1747_v48, 0.0  ;;  %v1768_v50 = vmul.f32 %v1747_v48, %v1747_v48 }
 0x30e   : > { %v1752_v51 = vadd.f32 %v1751_v8, %v1750_v49 }
 0x30f   : > { %v1770_v53 = vsel %vm1111_vm2, %v1768_v50, 0.0 }
 0x310   : > { %v1753_v54 = vrot.slane %v1752_v51, 4  ;;  %v1771_v16 = vadd.f32 %v1770_v53, %v1769_v52 }
 0x312   : > { %v1754_v35 = vadd.f32 %v1753_v54, %v1752_v51  ;;  %v1772_v58 = vrot.slane %v1771_v16, 4 }
 0x314   : > { %v1755_v59 = vrot.slane %v1754_v35, 2  ;;  %v1773_v60 = vadd.f32 %v1772_v58, %v1771_v16  ;;  %v3128_v58 = vld [vmem:[#allocation2 + $0x8] sm:$0xff] }
 0x316   : > { %v1756_v63 = vadd.f32 %v1755_v59, %v1754_v35  ;;  %v1774_v2 = vrot.slane %v1773_v60, 2 }
 0x318   : > { %v1757_v4 = vrot.slane %v1756_v63, 1  ;;  %v1775_v6 = vadd.f32 %v1774_v2, %v1773_v60  ;;  %v3131_v60 = vld [vmem:[#allocation2] sm:$0xff] }
 0x31a   : > { %v1758_v9 = vadd.f32 %v1757_v4, %v1756_v63  ;;  %v1776_v10 = vrot.slane %v1775_v6, 1  ;;  %v1857_v63 = vld [vmem:[%s3260_s3] sm:$0x3] }
 0x31c   : > { %v1766_v20 = vmul.f32 %v1765_v0, %v1758_v9  ;;  %v1777_v3 = vadd.f32 %v1776_v10, %v1775_v6  ;;  %v1910_v6 = vld [vmem:[%s2750_s26] sm:$0x1]  ;;  %v1884_v10 = vpop.permute.xlu0 %1883 }
 0x31d   : > { %v1913_v9 = vmul.f32 %v1910_v6, %v1910_v6 }
 0x31e   : > { %v1778_v21 = vmul.f32 %v1777_v3, %v1765_v0  ;;  %v1779_v56 = vmul.f32 %v1766_v20, %v1766_v20  ;;  %v1782_v25 = vsub.f32 %v1745_v43, %v1766_v20  ;;  %v1783_v36 = vsub.f32 %v1747_v48, %v1766_v20  ;;  %v2427_v20 = vld [vmem:[%s2750_s26] ss:$0 sm:$0xff] }
 0x31f   : > { %v1912_v0 = vmul.f32 2.0, %v1910_v6 }
 0x320   : > { %v1780_v19 = vsub.f32 %v1778_v21, %v1779_v56 }
 0x321   : > { %v1914_v56 = vsub.f32 %v1912_v0, %v1913_v9 }
 0x322   : > { %v1784_v5 = vadd.f32 1e-05, %v1780_v19 }
 0x324   : > { %2484 = vrsqrt.f32 %v1784_v5  ;;  %vm1791_vm15 = vweird.f32 %v1784_v5 }
 0x32a   : > { %v2485_v28 = vpop.eup %2484 }
 0x32b   : > { %v1786_v29 = vmul.f32 %v2485_v28, %v1784_v5  ;;  %vm1792_vm11 = vweird.f32 %v2485_v28  ;;  %v1920_v5 = vld [vmem:[%s3263_s14] sm:$0xff] }
 0x32c   : > { %vm1793_vm0 = vmor %vm1791_vm15, %vm1792_vm11 }
 0x32d   : > { %v1787_v30 = vmul.f32 %v2485_v28, %v1786_v29  ;;  %v1916_v29 = vperm.slane %v1914_v56, 0 }
 0x32f   : > { %v1788_v26 = vmul.f32 0.5, %v1787_v30 }
 0x331   : > { %v1789_v32 = vsub.f32 1.5, %v1788_v26 }
 0x333   : > { %v1790_v34 = vmul.f32 %v2485_v28, %v1789_v32 }
 0x335   : > { %v1794_v61 = vsel %vm1793_vm0, %v2485_v28, %v1790_v34 }
 0x336   : > { %v1795_v18 = vmul.f32 %v1794_v61, %v1782_v25  ;;  %v1796_v37 = vmul.f32 %v1794_v61, %v1783_v36  ;;  %v1921_v25 = vld [vmem:[%s3263_s14 + $0x8] sm:$0xff] }
 0x338   : > { %v1800_v13 = vmul.f32 %v2425_v33, %v1795_v18  ;;  %v1801_v39 = vmul.f32 %v2425_v33, %v1796_v37 }
 0x33a   : > { %v1807_v40 = vadd.f32 %v2426_v38, %v1801_v39  ;;  %v1806_v1 = vadd.f32 %v2426_v38, %v1800_v13 }
 0x33c   : > { %v2359_v41 = vmul.f32 -1.442695, %v1807_v40  ;;  %v2358_v27 = vmul.f32 -1.442695, %v1806_v1 }
 0x33e   : > { %2486 = vpow2.f32 %v2359_v41 }
 0x33f   : > { %2488 = vpow2.f32 %v2358_v27 }
 0x344   : > { %v2487_v14 = vpop.eup %2486 }
 0x345   : > { %v2489_v22 = vpop.eup %2488  ;;  %v1815_v12 = vadd.f32 1.0, %v2487_v14  ;;  %v2428_v14 = vld [vmem:[%s935_s9] ss:$0 sm:$0xff]  ;;  %s2543_s9 = smov 8  }
 0x346   : > { %v1814_v42 = vadd.f32 1.0, %v2489_v22 }
 0x347   : > { %2490 = vrcp.f32 %v1815_v12  ;;  %v1842_v24 = vand.u32 2147483648, %v1815_v12  ;;  %v1840_v46 = vand.u32 2147483647, %v1815_v12  ;;  %vm1836_vm5 = vweird.f32 %v1815_v12 }
 0x348   : > { %2492 = vrcp.f32 %v1814_v42  ;;  %v1827_v47 = vand.u32 2147483648, %v1814_v42  ;;  %v1825_v49 = vand.u32 2147483647, %v1814_v42  ;;  %vm1821_vm1 = vweird.f32 %v1814_v42 }
 0x349   : > { %v1843_v45 = vor.u32 1.1754944e-38, %v1842_v24  ;;  %vm1841_vm7 = vcmp.eq.f32.partialorder %v1840_v46, 8.507059e+37 }
 0x34a   : > { %v1828_v52 = vor.u32 1.1754944e-38, %v1827_v47  ;;  %vm1826_vm9 = vcmp.eq.f32.partialorder %v1825_v49, 8.507059e+37 }
 0x34d   : > { %v2491_v17 = vpop.eup %2490 }
 0x34e   : > { %v2493_v7 = vpop.eup %2492  ;;  %v1832_v55 = vmul.f32 %v2491_v17, %v1815_v12  ;;  %vm1837_vm3 = vweird.f32 %v2491_v17  ;;  %v2429_v12 = vld [vmem:[%s3265_s2] ss:$0 sm:$0xff] }
 0x34f   : > { %v1817_v15 = vmul.f32 %v2493_v7, %v1814_v42  ;;  %vm1822_vm4 = vweird.f32 %v2493_v7  ;;  %vm1838_vm6 = vmor %vm1836_vm5, %vm1837_vm3 }
 0x350   : > { %v1833_v23 = vsub.f32 1.0, %v1832_v55  ;;  %vm1823_vm8 = vmor %vm1821_vm1, %vm1822_vm4 }
 0x351   : > { %v1818_v43 = vsub.f32 1.0, %v1817_v15 }
 0x352   : > { %v1834_v44 = vmul.f32 %v2491_v17, %v1833_v23 }
 0x353   : > { %v1819_v48 = vmul.f32 %v2493_v7, %v1818_v43 }
 0x354   : > { %v1835_v8 = vadd.f32 %v2491_v17, %v1834_v44 }
 0x355   : > { %v1820_v50 = vadd.f32 %v2493_v7, %v1819_v48 }
 0x356   : > { %v1839_v51 = vsel %vm1838_vm6, %v2491_v17, %v1835_v8 }
 0x357   : > { %v1844_v53 = vsel %vm1841_vm7, %v1843_v45, %v1839_v51  ;;  %v1824_v54 = vsel %vm1823_vm8, %v2493_v7, %v1820_v50 }
 0x358   : > { %v1847_v16 = vmul.f32 %v1844_v53, %v1807_v40  ;;  %v1829_v57 = vsel %vm1826_vm9, %v1828_v52, %v1824_v54 }
 0x359   : > { %v1846_v35 = vmul.f32 %v1829_v57, %v1806_v1 }
 0x35a   : > { %v1849_v59 = vadd.f32 %v3128_v58, %v1847_v16 }
 0x35b   : > { %v1848_v62 = vadd.f32 %v3131_v60, %v1846_v35 }
 0x35c   : > { %1875 = vmatpush.msra.mxu3 %v1849_v59  ;;  %v1888_v2 = vmul.f32 %v1849_v59, %v1849_v59 }
 0x35d   : > { %v1887_v4 = vmul.f32 %v1848_v62, %v1848_v62 }
 0x35e   : > { %1876 = vmatpush.msra.mxu3 %v1848_v62 }
 0x35f   : > { %2360 = vmatmul.msk.f32.vlgmr.msra.gmra.mxu3 %vm3261_vm10, %v1857_v63 }
 0x360   : > { %1903 = vmatpush.msrb.mxu3 %v1888_v2 }
 0x362   : > { %1904 = vmatpush.msrb.mxu3 %v1887_v4 }
 0x367   : > { %2361 = vmatmul.msk.f32.vlgmr.msrb.gmra.mxu3 %vm3262_vm12, %v1857_v63 }
 0x3e2   : > { %v1878_v3 = vpop.f32.mrf.mxu3 }
 0x3e3   : > { %v1886_v21 = vmul.f32 %v1884_v10, %v1878_v3 }
 0x3e5   : > { %v1925_v19 = vmul.f32 %v2427_v20, %v1886_v21  ;;  %v1911_v28 = vmul.f32 %v1886_v21, %v1886_v21 }
 0x3e7   : > { %2362 = vmatpush.msk.msra.mxu3 %vm1933_vm13, %v1925_v19  ;;  %v1918_v32 = vmul.f32 %v1916_v29, %v1911_v28 }
 0x3e8   : > { %2363 = vmatmul.msk.f32.vlgmr.msra.gmra.mxu3 %vm1926_vm14, %v1920_v5 }
 0x3ea   : > { %v1906_v30 = vpop.f32.mrf.mxu3 }
 0x3eb   : > { %v1909_v26 = vmul.f32 %v1906_v30, %v1884_v10 }
 0x3ed   : > { %v1919_v34 = vsub.f32 %v1909_v26, %v1918_v32 }
 0x3ef   : > { %v1960_v36 = vadd.f32 1e-05, %v1919_v34 }
 0x3f0   : > { %2364 = vmatmul.msk.f32.gmra.mxu3 %vm1926_vm14, %v1921_v25 }
 0x3f1   : > { %2494 = vrsqrt.f32 %v1960_v36  ;;  %vm1967_vm15 = vweird.f32 %v1960_v36 }
 0x3f7   : > { %v2495_v33 = vpop.eup %2494 }
 0x3f8   : > { %v1962_v61 = vmul.f32 %v2495_v33, %v1960_v36  ;;  %vm1968_vm11 = vweird.f32 %v2495_v33 }
 0x3f9   : > { %vm1969_vm0 = vmor %vm1967_vm15, %vm1968_vm11 }
 0x3fa   : > { %v1963_v18 = vmul.f32 %v2495_v33, %v1962_v61 }
 0x3fc   : > { %v1964_v37 = vmul.f32 0.5, %v1963_v18 }
 0x3fe   : > { %v1965_v38 = vsub.f32 1.5, %v1964_v37 }
 0x400   : > { %v1966_v13 = vmul.f32 %v2495_v33, %v1965_v38 }
 0x402   : > { %v1970_v39 = vsel %vm1969_vm0, %v2495_v33, %v1966_v13 }
 0x403   : > { %2365 = vmatpush.msk.msra.mxu0 %vm1933_vm13, %v1970_v39  ;;  %2398 = vmatpush.msk.msra.mxu1 %vm1933_vm13, %v1970_v39 }
 0x404   : > { %2366 = vmatmul.msk.f32.vlgmr.msra.gmra.mxu0 %vm1926_vm14, %v1920_v5  ;;  %2367 = vmatmul.msk.f32.vlgmr.msra.gmra.mxu1 %vm1926_vm14, %v1921_v25 }
 0x46b   : > { %v1954_v40 = vpop.f32.mrf.mxu3 }
 0x46c   : > { %v1997_v41 = vsub.f32 %v1848_v62, %v1954_v40 }
 0x46e   : > { %v2003_v22 = vmul.f32 %v2428_v14, %v1997_v41 }
 0x473   : > { %v1957_v1 = vpop.f32.mrf.mxu3 }
 0x474   : > { %v1998_v27 = vsub.f32 %v1849_v59, %v1957_v1 }
 0x476   : > { %v2004_v42 = vmul.f32 %v2428_v14, %v1998_v27 }
 0x481   : > { %v1991_v11 = vpop.f32.mrf.mxu0  ;;  %v1994_v31 = vpop.f32.mrf.mxu1 }
 0x482   : > { %v2005_v17 = vmul.f32 %v2003_v22, %v1991_v11  ;;  %v2006_v7 = vmul.f32 %v2004_v42, %v1994_v31 }
 0x484   : > { %v2011_v55 = vadd.f32 %v2429_v12, %v2005_v17  ;;  %v2012_v15 = vadd.f32 %v2429_v12, %v2006_v7 }
 0x486   : > { %v2013_v23 = vadd.f32 %v3131_v60, %v2011_v55  ;;  %v2014_v24 = vadd.f32 %v3128_v58, %v2012_v15 }
 0x488   : > { %2015 = vst.msk [vmem:[#allocation2] sm:$0xff] %vm1111_vm2, %v2013_v23 }
 0x489   : > { %2023 = vst.msk [vmem:[#allocation4] sm:$0xff] %vm1111_vm2, %v2013_v23 }
 0x48a   : > { %2016 = vst.msk [vmem:[#allocation2 + $0x8] sm:$0xff] %vm1111_vm2, %v2014_v24 }
 0x48b   : > { %2024 = vst.msk [vmem:[#allocation4 + $0x8] sm:$0xff] %vm1111_vm2, %v2014_v24 }
 0x48c   : > { %2400 = dma.vmem_to_hbm [thread:$0]  (%p2403_p5), %s2037_s24, 256, %s2039_s11, [#allocation5], %s2542_s27, %s2542_s27, %s2543_s9  }
 0x48d   : > { %2531 = dma.done.wait (%p2403_p5), [#allocation5], 256  }
 0x48e   : > { %2533 = vsyncadd (%p2403_p5), [#allocation5], 4294967040 }
 0x48f PF: > { %s3267_s26 = sld [smem:[#allocation7_spill]] }
 0x495   : > { %s36_s5 = sadd.s32 1, %s3267_s26  }
 0x496   : > { %p33_p6 = scmp.ge.s32.totalorder %s36_s5, 4  }
 0x498   :  { %35 = sbr.rel (!%p33_p6) target bundleno = 18 (0x12), region = 193 }
 0x49d   :  { %2061 = vsyncpa [#allocation5], 1 }
 0x49e   :  { %2063 = vsyncpa [#allocation5 + $0x1], 1 }

</bundles_post_ra>
